<compile_context>
chip_gen: v5e
topology: v5e:2x2
jax: 0.10.0
libtpu: 0.0.40
codegen_flags: <defaults>
</compile_context>

<pallas_src>
import jax
import jax.numpy as jnp
from jax import lax
from jax.experimental import pallas as pl
from jax.experimental.pallas import tpu as pltpu


def _self_attn_kernel(xq_ref, xk_ref, wqk_ref, bqk_ref, wvt_ref, bv_ref,
                      gamma_ref, o_ref, g_sc, m_sc, l_sc, acc_sc):
    kv = pl.program_id(2)

    xq = xq_ref[0]          # (tq, C) f32  (queries + residual input)
    xk = xk_ref[0]          # (tk, C) bf16 (key / value rows)

    # ---- per-(b, q-tile): folded query-side projection + accumulator init ----
    @pl.when(kv == 0)
    def _init():
        g = jnp.dot(xq.astype(jnp.bfloat16), wqk_ref[...],
                    preferred_element_type=jnp.float32) + bqk_ref[...]
        g_sc[...] = g.astype(g_sc.dtype)
        m_sc[...] = jnp.full(m_sc.shape, -jnp.inf, m_sc.dtype)
        l_sc[...] = jnp.zeros(l_sc.shape, l_sc.dtype)
        acc_sc[...] = jnp.zeros(acc_sc.shape, acc_sc.dtype)

    # value projection for this kv tile (1x1 conv == channel matmul, bf16 MXU)
    v = jnp.dot(xk, wvt_ref[...], preferred_element_type=jnp.float32) + bv_ref[...]

    # energy tile: contract last (channel) dims of g and xk — no in-kernel transpose
    energy = lax.dot_general(g_sc[...], xk, (((1,), (1,)), ((), ())),
                             preferred_element_type=jnp.float32)   # (tq, tk)

    # ---- online softmax update ----
    m_prev = m_sc[...]
    m_new = jnp.maximum(m_prev, jnp.max(energy, axis=-1, keepdims=True))
    alpha = jnp.exp(m_prev - m_new)
    p = jnp.exp(energy - m_new)
    l_sc[...] = alpha * l_sc[...] + jnp.sum(p, axis=-1, keepdims=True)
    acc_sc[...] = alpha * acc_sc[...] + jnp.dot(
        p.astype(jnp.bfloat16), v.astype(jnp.bfloat16),
        preferred_element_type=jnp.float32)
    m_sc[...] = m_new

    # ---- finalize: normalize, gamma residual, store ----
    @pl.when(kv == pl.num_programs(2) - 1)
    def _finalize():
        out = acc_sc[...] * pl.reciprocal(l_sc[...], approx=True)
        o_ref[0] = (gamma_ref[0] * out + xq).astype(o_ref.dtype)


def _pick_tile(n):
    for t in (128, 256, 512, 64, 32, 16, 8):
        if n % t == 0:
            return t
    return n


def self_attention_pallas(x_nchw, wq, bq, wk, bk, wv, bv, gamma):
    """x_nchw: (B, C, H, W) float32. Conv weights in PyTorch (out, in) layout."""
    B, C, H, W = x_nchw.shape
    N = H * W

    # NCHW -> (B, N, C); N flattens (H, W) row-major, same as torch .view(B, C, H*W).
    x_bnc = jnp.transpose(x_nchw, (0, 2, 3, 1)).reshape(B, N, C).astype(jnp.float32)
    x_bnc_bf = x_bnc.astype(jnp.bfloat16)     # key/value side copy (re-read per q tile)

    # Fold Q/K 1x1 convs + biases into one C-wide bilinear form (softmax-equivalent).
    wq32, wk32 = wq.astype(jnp.float32), wk.astype(jnp.float32)
    wqk = (wq32.T @ wk32).astype(jnp.bfloat16)                 # (C, C)   = Wq^T Wk
    bqk = (bq.astype(jnp.float32) @ wk32).reshape(1, C)        # (1, C)   = bq @ Wk
    wvt = wv.astype(jnp.float32).T.astype(jnp.bfloat16)        # (C, C)   pre-transposed
    bv2 = bv.astype(jnp.float32).reshape(1, C)
    gamma1 = jnp.asarray(gamma, jnp.float32).reshape(1,)       # SMEM scalar

    tq = tk = _pick_tile(N)
    n_q, n_kv = N // tq, N // tk

    cost = pl.CostEstimate(
        flops=int(B * (4 * N * N * C + 2 * N * C * C * (1 + n_q))),
        transcendentals=int(2 * B * N * N),
        bytes_accessed=int(B * N * C * 8 + B * n_q * N * C * 2 + 4 * C * C),
    )

    out_bnc = pl.pallas_call(
        _self_attn_kernel,
        out_shape=jax.ShapeDtypeStruct((B, N, C), jnp.float32),
        grid_spec=pltpu.PrefetchScalarGridSpec(
            num_scalar_prefetch=0,
            grid=(B, n_q, n_kv),
            in_specs=[
                pl.BlockSpec((1, tq, C), lambda b, q, k: (b, q, 0)),  # x (queries, f32)
                pl.BlockSpec((1, tk, C), lambda b, q, k: (b, k, 0)),  # x (keys, bf16)
                pl.BlockSpec((C, C), lambda b, q, k: (0, 0)),         # Wq^T Wk (bf16)
                pl.BlockSpec((1, C), lambda b, q, k: (0, 0)),         # bq @ Wk (f32)
                pl.BlockSpec((C, C), lambda b, q, k: (0, 0)),         # Wv^T (bf16)
                pl.BlockSpec((1, C), lambda b, q, k: (0, 0)),         # bv (f32)
                pl.BlockSpec(memory_space=pltpu.MemorySpace.SMEM),    # gamma scalar
            ],
            out_specs=pl.BlockSpec((1, tq, C), lambda b, q, k: (b, q, 0)),
            scratch_shapes=[
                pltpu.VMEM((tq, C), jnp.bfloat16),   # folded query projection g
                pltpu.VMEM((tq, 1), jnp.float32),    # running max
                pltpu.VMEM((tq, 1), jnp.float32),    # running denom
                pltpu.VMEM((tq, C), jnp.float32),    # output accumulator
            ],
        ),
        compiler_params=pltpu.CompilerParams(
            dimension_semantics=("parallel", "parallel", "arbitrary")),
        cost_estimate=cost,
    )(x_bnc, x_bnc_bf, wqk, bqk, wvt, bv2, gamma1)

    # (B, N, C) -> NCHW
    return jnp.transpose(out_bnc.reshape(B, H, W, C), (0, 3, 1, 2))


def self_attention_ref(x_nchw, wq, bq, wk, bk, wv, bv, gamma):
    """Plain-JAX f32 reference mirroring the PyTorch forward exactly."""
    B, C, H, W = x_nchw.shape
    N = H * W
    q = jnp.einsum('bchw,oc->bohw', x_nchw, wq) + bq[None, :, None, None]
    k = jnp.einsum('bchw,oc->bohw', x_nchw, wk) + bk[None, :, None, None]
    v = jnp.einsum('bchw,oc->bohw', x_nchw, wv) + bv[None, :, None, None]
    proj_query = q.reshape(B, -1, N).transpose(0, 2, 1)           # (B, N, C8)
    proj_key = k.reshape(B, -1, N)                                # (B, C8, N)
    energy = jnp.einsum('bnc,bcm->bnm', proj_query, proj_key)     # (B, N, N)
    attention = jax.nn.softmax(energy, axis=-1)
    proj_value = v.reshape(B, -1, N)                              # (B, C, N)
    out = jnp.einsum('bcn,bmn->bcm', proj_value, attention)       # (B, C, N)
    out = out.reshape(B, C, H, W)
    return gamma * out + x_nchw


if __name__ == "__main__":
    key = jax.random.PRNGKey(0)
    B, C, H, W = 2, 64, 16, 16        # in_dim=64 -> query/key dim = 8; N = 256
    C8 = C // 8

    k_x, k_wq, k_bq, k_wk, k_bk, k_wv, k_bv = jax.random.split(key, 7)
    x = jax.random.normal(k_x, (B, C, H, W), jnp.float32)
    wq = jax.random.normal(k_wq, (C8, C), jnp.float32) * 0.1
    bq = jax.random.normal(k_bq, (C8,), jnp.float32) * 0.1
    wk = jax.random.normal(k_wk, (C8, C), jnp.float32) * 0.1
    bk = jax.random.normal(k_bk, (C8,), jnp.float32) * 0.1
    wv = jax.random.normal(k_wv, (C, C), jnp.float32) * 0.1
    bv = jax.random.normal(k_bv, (C,), jnp.float32) * 0.1
    # PyTorch inits gamma to 0 (out == x); use a nonzero value so the attention
    # path is actually exercised.
    gamma = jnp.float32(0.5)

    out = self_attention_pallas(x, wq, bq, wk, bk, wv, bv, gamma)
    out = jax.block_until_ready(out)

    ref = self_attention_ref(x, wq, bq, wk, bk, wv, bv, gamma)
    assert out.shape == (B, C, H, W)
    # bf16 MXU operands (f32 accumulation) + approx reciprocal + folded QK form
    # loosen the comparison vs. the pure-f32 reference; 2e-2 leaves ample margin
    # over the observed/estimated ~3e-3 worst-case deviation.
    assert jnp.allclose(out, ref, atol=2e-2, rtol=2e-2), "mismatch vs reference"

    print("KERNEL_OK")
</pallas_src>

<mosaic_0001>
module attributes {stable_mosaic.version = 11 : i64} {
  func.func @_self_attn_kernel(%arg0: i32, %arg1: i32, %arg2: i32, %arg3: memref<1x128x64xf32, #tpu.memory_space<vmem>>, %arg4: memref<1x128x64xbf16, #tpu.memory_space<vmem>>, %arg5: memref<64x64xbf16, #tpu.memory_space<vmem>>, %arg6: memref<1x64xf32, #tpu.memory_space<vmem>>, %arg7: memref<64x64xbf16, #tpu.memory_space<vmem>>, %arg8: memref<1x64xf32, #tpu.memory_space<vmem>>, %arg9: memref<1xf32, #tpu.memory_space<smem>>, %arg10: memref<1x128x64xf32, #tpu.memory_space<vmem>>, %arg11: memref<128x64xbf16, #tpu.memory_space<vmem>>, %arg12: memref<128x1xf32, #tpu.memory_space<vmem>>, %arg13: memref<128x1xf32, #tpu.memory_space<vmem>>, %arg14: memref<128x64xf32, #tpu.memory_space<vmem>>) attributes {dimension_semantics = [#tpu.dimension_semantics<parallel>, #tpu.dimension_semantics<parallel>, #tpu.dimension_semantics<arbitrary>], iteration_bounds = array<i64: 2, 2, 2>, scalar_prefetch = 0 : i64, scratch_operands = 4 : i64, tpu.core_type = #tpu.core_type<tc>, window_params = [{transform_indices = @transform_0, window_bounds = array<i64: 1, 128, 64>}, {transform_indices = @transform_1, window_bounds = array<i64: 1, 128, 64>}, {pipeline_mode = #tpu.pipeline_mode<synchronous>, transform_indices = @transform_2, window_bounds = array<i64: 64, 64>}, {pipeline_mode = #tpu.pipeline_mode<synchronous>, transform_indices = @transform_3, window_bounds = array<i64: 1, 64>}, {pipeline_mode = #tpu.pipeline_mode<synchronous>, transform_indices = @transform_4, window_bounds = array<i64: 64, 64>}, {pipeline_mode = #tpu.pipeline_mode<synchronous>, transform_indices = @transform_5, window_bounds = array<i64: 1, 64>}, {transform_indices = @transform_6, window_bounds = array<i64: 1>}, {transform_indices = @transform_7, window_bounds = array<i64: 1, 128, 64>}]} {
    %c0 = arith.constant 0 : index
    %c0_0 = arith.constant 0 : index
    %c0_1 = arith.constant 0 : index
    %0 = vector.load %arg3[%c0, %c0_0, %c0_1] : memref<1x128x64xf32, #tpu.memory_space<vmem>>, vector<1x128x64xf32>
    %1 = vector.shape_cast %0 : vector<1x128x64xf32> to vector<128x64xf32>
    %c0_2 = arith.constant 0 : index
    %c0_3 = arith.constant 0 : index
    %c0_4 = arith.constant 0 : index
    %2 = vector.load %arg4[%c0_2, %c0_3, %c0_4] : memref<1x128x64xbf16, #tpu.memory_space<vmem>>, vector<1x128x64xbf16>
    %3 = vector.shape_cast %2 : vector<1x128x64xbf16> to vector<128x64xbf16>
    %c0_i32 = arith.constant 0 : i32
    %4 = arith.cmpi eq, %arg2, %c0_i32 : i32
    %5 = arith.extui %4 : i1 to i32
    %c0_i32_5 = arith.constant 0 : i32
    %6 = arith.cmpi ne, %5, %c0_i32_5 : i32
    scf.if %6 {
      %41 = arith.truncf %1 : vector<128x64xf32> to vector<128x64xbf16>
      %c0_29 = arith.constant 0 : index
      %c0_30 = arith.constant 0 : index
      %42 = vector.load %arg5[%c0_29, %c0_30] : memref<64x64xbf16, #tpu.memory_space<vmem>>, vector<64x64xbf16>
      %cst_31 = arith.constant dense<0.000000e+00> : vector<128x64xf32>
      %43 = tpu.matmul %41, %42, %cst_31 {dimension_numbers = #tpu.dot_dimension_numbers<[1], [0], [0], [1], [0, 0, 1, 1], [], []>} : vector<128x64xbf16>, vector<64x64xbf16>, vector<128x64xf32> -> vector<128x64xf32>
      %c0_32 = arith.constant 0 : index
      %c0_33 = arith.constant 0 : index
      %44 = vector.load %arg6[%c0_32, %c0_33] : memref<1x64xf32, #tpu.memory_space<vmem>>, vector<1x64xf32>
      %45 = vector.broadcast %44 : vector<1x64xf32> to vector<128x64xf32>
      %46 = arith.addf %43, %45 : vector<128x64xf32>
      %47 = arith.truncf %46 : vector<128x64xf32> to vector<128x64xbf16>
      %c0_34 = arith.constant 0 : index
      %c0_35 = arith.constant 0 : index
      %48 = vector.load %arg11[%c0_34, %c0_35] : memref<128x64xbf16, #tpu.memory_space<vmem>>, vector<128x64xbf16>
      tpu.vector_store %arg11[%c0_34, %c0_35], %47 {strides = array<i32>} : memref<128x64xbf16, #tpu.memory_space<vmem>>, vector<128x64xbf16>,
      %cst_36 = arith.constant 0xFF800000 : f32
      %49 = vector.broadcast %cst_36 : f32 to vector<128x1xf32>
      %c0_37 = arith.constant 0 : index
      %c0_38 = arith.constant 0 : index
      %50 = vector.load %arg12[%c0_37, %c0_38] : memref<128x1xf32, #tpu.memory_space<vmem>>, vector<128x1xf32>
      tpu.vector_store %arg12[%c0_37, %c0_38], %49 {strides = array<i32>} : memref<128x1xf32, #tpu.memory_space<vmem>>, vector<128x1xf32>,
      %cst_39 = arith.constant 0.000000e+00 : f32
      %51 = vector.broadcast %cst_39 : f32 to vector<128x1xf32>
      %c0_40 = arith.constant 0 : index
      %c0_41 = arith.constant 0 : index
      %52 = vector.load %arg13[%c0_40, %c0_41] : memref<128x1xf32, #tpu.memory_space<vmem>>, vector<128x1xf32>
      tpu.vector_store %arg13[%c0_40, %c0_41], %51 {strides = array<i32>} : memref<128x1xf32, #tpu.memory_space<vmem>>, vector<128x1xf32>,
      %cst_42 = arith.constant 0.000000e+00 : f32
      %53 = vector.broadcast %cst_42 : f32 to vector<128x64xf32>
      %c0_43 = arith.constant 0 : index
      %c0_44 = arith.constant 0 : index
      %54 = vector.load %arg14[%c0_43, %c0_44] : memref<128x64xf32, #tpu.memory_space<vmem>>, vector<128x64xf32>
      tpu.vector_store %arg14[%c0_43, %c0_44], %53 {strides = array<i32>} : memref<128x64xf32, #tpu.memory_space<vmem>>, vector<128x64xf32>,
    } else {
    }
    %c0_6 = arith.constant 0 : index
    %c0_7 = arith.constant 0 : index
    %7 = vector.load %arg7[%c0_6, %c0_7] : memref<64x64xbf16, #tpu.memory_space<vmem>>, vector<64x64xbf16>
    %cst = arith.constant dense<0.000000e+00> : vector<128x64xf32>
    %8 = tpu.matmul %3, %7, %cst {dimension_numbers = #tpu.dot_dimension_numbers<[1], [0], [0], [1], [0, 0, 1, 1], [], []>} : vector<128x64xbf16>, vector<64x64xbf16>, vector<128x64xf32> -> vector<128x64xf32>
    %c0_8 = arith.constant 0 : index
    %c0_9 = arith.constant 0 : index
    %9 = vector.load %arg8[%c0_8, %c0_9] : memref<1x64xf32, #tpu.memory_space<vmem>>, vector<1x64xf32>
    %10 = vector.broadcast %9 : vector<1x64xf32> to vector<128x64xf32>
    %11 = arith.addf %8, %10 : vector<128x64xf32>
    %c0_10 = arith.constant 0 : index
    %c0_11 = arith.constant 0 : index
    %12 = vector.load %arg11[%c0_10, %c0_11] : memref<128x64xbf16, #tpu.memory_space<vmem>>, vector<128x64xbf16>
    %cst_12 = arith.constant dense<0.000000e+00> : vector<128x128xf32>
    %13 = tpu.matmul %12, %3, %cst_12 {dimension_numbers = #tpu.dot_dimension_numbers<[1], [1], [0], [0], [0, 0, 1, 0], [], []>} : vector<128x64xbf16>, vector<128x64xbf16>, vector<128x128xf32> -> vector<128x128xf32>
    %c0_13 = arith.constant 0 : index
    %c0_14 = arith.constant 0 : index
    %14 = vector.load %arg12[%c0_13, %c0_14] : memref<128x1xf32, #tpu.memory_space<vmem>>, vector<128x1xf32>
    %cst_15 = arith.constant dense<0xFF800000> : vector<128xf32>
    %15 = vector.multi_reduction <maximumf>, %13, %cst_15 [1] : vector<128x128xf32> to vector<128xf32>
    %16 = vector.shape_cast %15 : vector<128xf32> to vector<128x1xf32>
    %17 = arith.maximumf %14, %16 : vector<128x1xf32>
    %18 = arith.subf %14, %17 : vector<128x1xf32>
    %19 = math.exp %18 : vector<128x1xf32>
    %20 = vector.broadcast %17 : vector<128x1xf32> to vector<128x128xf32>
    %21 = arith.subf %13, %20 : vector<128x128xf32>
    %22 = math.exp %21 : vector<128x128xf32>
    %c0_16 = arith.constant 0 : index
    %c0_17 = arith.constant 0 : index
    %23 = vector.load %arg13[%c0_16, %c0_17] : memref<128x1xf32, #tpu.memory_space<vmem>>, vector<128x1xf32>
    %24 = arith.mulf %19, %23 : vector<128x1xf32>
    %cst_18 = arith.constant dense<0.000000e+00> : vector<128xf32>
    %25 = vector.multi_reduction <add>, %22, %cst_18 [1] : vector<128x128xf32> to vector<128xf32>
    %26 = vector.shape_cast %25 : vector<128xf32> to vector<128x1xf32>
    %27 = arith.addf %24, %26 : vector<128x1xf32>
    %c0_19 = arith.constant 0 : index
    %c0_20 = arith.constant 0 : index
    %28 = vector.load %arg13[%c0_19, %c0_20] : memref<128x1xf32, #tpu.memory_space<vmem>>, vector<128x1xf32>
    tpu.vector_store %arg13[%c0_19, %c0_20], %27 {strides = array<i32>} : memref<128x1xf32, #tpu.memory_space<vmem>>, vector<128x1xf32>,
    %c0_21 = arith.constant 0 : index
    %c0_22 = arith.constant 0 : index
    %29 = vector.load %arg14[%c0_21, %c0_22] : memref<128x64xf32, #tpu.memory_space<vmem>>, vector<128x64xf32>
    %30 = vector.broadcast %19 : vector<128x1xf32> to vector<128x64xf32>
    %31 = arith.mulf %30, %29 : vector<128x64xf32>
    %32 = arith.truncf %22 : vector<128x128xf32> to vector<128x128xbf16>
    %33 = arith.truncf %11 : vector<128x64xf32> to vector<128x64xbf16>
    %cst_23 = arith.constant dense<0.000000e+00> : vector<128x64xf32>
    %34 = tpu.matmul %32, %33, %cst_23 {dimension_numbers = #tpu.dot_dimension_numbers<[1], [0], [0], [1], [0, 0, 1, 1], [], []>} : vector<128x128xbf16>, vector<128x64xbf16>, vector<128x64xf32> -> vector<128x64xf32>
    %35 = arith.addf %31, %34 : vector<128x64xf32>
    %c0_24 = arith.constant 0 : index
    %c0_25 = arith.constant 0 : index
    %36 = vector.load %arg14[%c0_24, %c0_25] : memref<128x64xf32, #tpu.memory_space<vmem>>, vector<128x64xf32>
    tpu.vector_store %arg14[%c0_24, %c0_25], %35 {strides = array<i32>} : memref<128x64xf32, #tpu.memory_space<vmem>>, vector<128x64xf32>,
    %c0_26 = arith.constant 0 : index
    %c0_27 = arith.constant 0 : index
    %37 = vector.load %arg12[%c0_26, %c0_27] : memref<128x1xf32, #tpu.memory_space<vmem>>, vector<128x1xf32>
    tpu.vector_store %arg12[%c0_26, %c0_27], %17 {strides = array<i32>} : memref<128x1xf32, #tpu.memory_space<vmem>>, vector<128x1xf32>,
    %c1_i32 = arith.constant 1 : i32
    %38 = arith.cmpi eq, %arg2, %c1_i32 : i32
    %39 = arith.extui %38 : i1 to i32
    %c0_i32_28 = arith.constant 0 : i32
    %40 = arith.cmpi ne, %39, %c0_i32_28 : i32
    scf.if %40 {
      %c0_29 = arith.constant 0 : index
      %c0_30 = arith.constant 0 : index
      %41 = vector.load %arg14[%c0_29, %c0_30] : memref<128x64xf32, #tpu.memory_space<vmem>>, vector<128x64xf32>
      %c0_31 = arith.constant 0 : index
      %c0_32 = arith.constant 0 : index
      %42 = vector.load %arg13[%c0_31, %c0_32] : memref<128x1xf32, #tpu.memory_space<vmem>>, vector<128x1xf32>
      %43 = tpu.reciprocal %42 {approx = true} : vector<128x1xf32> -> vector<128x1xf32>
      %44 = vector.broadcast %43 : vector<128x1xf32> to vector<128x64xf32>
      %45 = arith.mulf %41, %44 : vector<128x64xf32>
      %c0_33 = arith.constant 0 : index
      %46 = memref.load %arg9[%c0_33] : memref<1xf32, #tpu.memory_space<smem>>
      %47 = vector.broadcast %46 : f32 to vector<128x64xf32>
      %48 = arith.mulf %47, %45 : vector<128x64xf32>
      %49 = arith.addf %48, %1 : vector<128x64xf32>
      %c0_34 = arith.constant 0 : index
      %c0_35 = arith.constant 0 : index
      %c0_36 = arith.constant 0 : index
      %50 = vector.load %arg10[%c0_34, %c0_35, %c0_36] : memref<1x128x64xf32, #tpu.memory_space<vmem>>, vector<1x128x64xf32>
      %51 = vector.shape_cast %50 : vector<1x128x64xf32> to vector<128x64xf32>
      %52 = vector.shape_cast %49 : vector<128x64xf32> to vector<1x128x64xf32>
      tpu.vector_store %arg10[%c0_34, %c0_35, %c0_36], %52 {strides = array<i32>} : memref<1x128x64xf32, #tpu.memory_space<vmem>>, vector<1x128x64xf32>,
    } else {
    }
    return
  }
  func.func @transform_0(%arg0: i32, %arg1: i32, %arg2: i32) -> (i32, i32, i32) {
    %c0_i32 = arith.constant 0 : i32
    %c0_i32_0 = arith.constant 0 : i32
    return %arg0, %arg1, %c0_i32 : i32, i32, i32
  }
  func.func @transform_1(%arg0: i32, %arg1: i32, %arg2: i32) -> (i32, i32, i32) {
    %c0_i32 = arith.constant 0 : i32
    %c0_i32_0 = arith.constant 0 : i32
    return %arg0, %arg2, %c0_i32 : i32, i32, i32
  }
  func.func @transform_2(%arg0: i32, %arg1: i32, %arg2: i32) -> (i32, i32) {
    %c0_i32 = arith.constant 0 : i32
    %c0_i32_0 = arith.constant 0 : i32
    %c0_i32_1 = arith.constant 0 : i32
    return %c0_i32, %c0_i32_0 : i32, i32
  }
  func.func @transform_3(%arg0: i32, %arg1: i32, %arg2: i32) -> (i32, i32) {
    %c0_i32 = arith.constant 0 : i32
    %c0_i32_0 = arith.constant 0 : i32
    %c0_i32_1 = arith.constant 0 : i32
    return %c0_i32, %c0_i32_0 : i32, i32
  }
  func.func @transform_4(%arg0: i32, %arg1: i32, %arg2: i32) -> (i32, i32) {
    %c0_i32 = arith.constant 0 : i32
    %c0_i32_0 = arith.constant 0 : i32
    %c0_i32_1 = arith.constant 0 : i32
    return %c0_i32, %c0_i32_0 : i32, i32
  }
  func.func @transform_5(%arg0: i32, %arg1: i32, %arg2: i32) -> (i32, i32) {
    %c0_i32 = arith.constant 0 : i32
    %c0_i32_0 = arith.constant 0 : i32
    %c0_i32_1 = arith.constant 0 : i32
    return %c0_i32, %c0_i32_0 : i32, i32
  }
  func.func @transform_6(%arg0: i32, %arg1: i32, %arg2: i32) -> i32 {
    %c0_i32 = arith.constant 0 : i32
    %c0_i32_0 = arith.constant 0 : i32
    return %c0_i32 : i32
  }
  func.func @transform_7(%arg0: i32, %arg1: i32, %arg2: i32) -> (i32, i32, i32) {
    %c0_i32 = arith.constant 0 : i32
    %c0_i32_0 = arith.constant 0 : i32
    return %arg0, %arg1, %c0_i32 : i32, i32, i32
  }
}

</mosaic_0001>

<bundles_post_ra>
// kernel: tpu_custom_call.1
= control target key start
LH: loop header
LB: loop body
LE: loop exit
PB: predicated region body
PF: predicated region fallthrough
CT: control target
= control target key end

     0   :  { %s2209_s26 = smov 0   ;;  %s2211_s27 = smov 0   ;;  %s3011_s0 = inlined_call_operand.vmem [shape: f32[2,256,64], index: 0, kind: input, shape index: {}]   ;;  %s3012_s1 = inlined_call_operand.vmem [shape: bf16[2,256,64], index: 1, kind: input, shape index: {}]   ;;  %s3013_s2 = inlined_call_operand.vmem [shape: bf16[64,64], index: 2, kind: input, shape index: {}]   ;;  %s3014_s3 = inlined_call_operand.vmem [shape: f32[1,64], index: 3, kind: input, shape index: {}]   ;;  %s3015_s4 = inlined_call_operand.vmem [shape: bf16[64,64], index: 4, kind: input, shape index: {}]   ;;  %s3016_s5 = inlined_call_operand.vmem [shape: f32[1,64], index: 5, kind: input, shape index: {}]   ;;  %s3017_s6 = inlined_call_operand.<no memory space> [shape: f32[1], index: 6, kind: input, shape index: {}]   ;;  %s3018_s7 = inlined_call_operand.vmem [shape: f32[2,256,64], index: 7, kind: output, shape index: {}]  }
   0x1   :  { %12 = sst [smem:[#allocation6]] %s3017_s6  ;;  %s2213_s28 = smov 0  }
   0x2   :  { %s2215_s29 = smov 0   ;;  %s2217_s30 = smov 0  }
   0x3   :  { %s2219_s8 = smov 0   ;;  %s2221_s9 = smov 0  }
   0x4 LB: > { %s30_s6 = sadd.s32 1, %s2148_s29  ;;  %s33_s10 = sadd.s32 1, %s2152_s30  ;;  %s2160_s9 = sphi %s2221_s9, %s18_s9   ;;  %s2156_s8 = sphi %s2219_s8, %s3045_s8   ;;  %s2152_s30 = sphi %s2217_s30, %s3044_s30   ;;  %s2148_s29 = sphi %s2215_s29, %s3043_s29   ;;  %s2144_s28 = sphi %s2213_s28, %s3042_s28   ;;  %s2140_s27 = sphi %s2211_s27, %s3041_s27   ;;  %s2136_s26 = sphi %s2209_s26, %s3040_s26  }
   0x5   : > { %p31_p0 = scmp.ge.s32.totalorder %s30_s6, 2  ;;  %p1756_p1 = scmp.ge.s32.totalorder %s2160_s9, 1 }
   0x6   : > { %p283_p2 = scmp.lt.s32.totalorder %s2160_s9, 9  ;;  %s37_s11 = sadd.s32 1, %s2156_s8 }
   0x7   : > { %s3047_s6 = smov (%p31_p0, %s30_s6), 0  ;;  %s3049_s10 = smov (!%p31_p0, %s33_s10), %s2152_s30 }
   0x8   : > { %p284_p3 = pnand %p1756_p1, %p283_p2  ;;  %p35_p4 = scmp.ge.s32.totalorder %s3049_s10, 2 }
   0xa   : > { %s3051_s10 = smov (%p35_p4, %s3049_s10), 0  ;;  %s3053_s11 = smov (!%p35_p4, %s37_s11), %s2156_s8 }
   0xb   : > { %p39_p5 = scmp.ge.s32.totalorder %s3053_s11, 2  ;;  %287 = sbr.rel (%p284_p3) target bundleno = 1189 (0x4a5), region = 48 }
   0xd   : > { %s3055_s11 = smov (%p39_p5, %s3053_s11), 0 }
  0x10   : > { %s1757_s12 = sshll.u32 %s2140_s27, 4  ;;  %p333_p6 = scmp.lt.s32.totalorder %s2144_s28, 1 }
  0x11   : > { %p335_p7 = scmp.lt.s32.totalorder %s1757_s12, 31  ;;  %s1760_s13 = sshll.u32 %s2136_s26, 4 }
  0x12   : > { %s3057_s28 = smov (!%p333_p6, %s2144_s28), 1  ;;  %p345_p8 = scmp.lt.s32.totalorder %s1760_s13, 31 }
  0x13   : > { %s3059_s12 = smov (!%p335_p7, %s1757_s12), 31  ;;  %s1758_s14 = sshll.u32 %s3057_s28, 5 }
  0x14   : > { %s338_s15 = sadd.s32 %s1758_s14, %s3059_s12  ;;  %s3061_s13 = smov (!%p345_p8, %s1760_s13), 31 }
  0x15   : > { %s1759_s16 = sshll.u32 %s338_s15, 3  ;;  %s348_s23 = sadd.s32 %s1758_s14, %s3061_s13 }
  0x16   : > { %s340_s19 = scalar_lea.vmem %s3011_s0, %s1759_s16  ;;  %s2260_s22 = scalar_lea.vmem %s3018_s7, %s1759_s16 }
  0x17   : > { %v2262_v0 = vld [vmem:[%s340_s19] sm:$0xff]  ;;  %v2264_v1 = vld [vmem:[%s340_s19 + $0x8] sm:$0xff]  ;;  %v2266_v2 = vld [vmem:[%s340_s19 + $0x10] sm:$0xff]  ;;  %s1762_s24 = sshll.u32 %s348_s23, 2  ;;  %p1766_p9 = scmp.ne.s32.totalorder %s2136_s26, 0 }
  0x18   : > { %v2268_v3 = vld [vmem:[%s340_s19 + $0x18] sm:$0xff]  ;;  %v2270_v4 = vld [vmem:[%s340_s19 + $0x20] sm:$0xff]  ;;  %v2272_v5 = vld [vmem:[%s340_s19 + $0x28] sm:$0xff]  ;;  %s350_s28 = scalar_lea.vmem %s3012_s1, %s1762_s24 }
  0x19   : > { %v2274_v6 = vld [vmem:[%s340_s19 + $0x30] sm:$0xff]  ;;  %v2276_v7 = vld [vmem:[%s340_s19 + $0x38] sm:$0xff]  ;;  %v2278_v8 = vld [vmem:[%s340_s19 + $0x40] sm:$0xff] }
  0x1a   : > { %v2280_v9 = vld [vmem:[%s340_s19 + $0x48] sm:$0xff]  ;;  %v2282_v10 = vld [vmem:[%s340_s19 + $0x50] sm:$0xff]  ;;  %v2284_v11 = vld [vmem:[%s340_s19 + $0x58] sm:$0xff] }
  0x1b   : > { %3023 = vst [vmem:[#allocation7_spill] sm:$0xff] %v2280_v9  ;;  %v2289_v12 = vld [vmem:[%s340_s19 + $0x60] sm:$0xff]  ;;  %v2291_v13 = vld [vmem:[%s340_s19 + $0x68] sm:$0xff]  ;;  %v2293_v14 = vld [vmem:[%s340_s19 + $0x70] sm:$0xff] }
  0x1c   : > { %3024 = vst [vmem:[#allocation8_spill] sm:$0xff] %v2289_v12  ;;  %v2295_v15 = vld [vmem:[%s340_s19 + $0x78] sm:$0xff]  ;;  %v2297_v16 = vld [vmem:[%s350_s28] sm:$0xf]  ;;  %v2299_v17 = vld [vmem:[%s350_s28] sm:$0xf0] }
  0x1d   : > { %3025 = vst [vmem:[#allocation9_spill] sm:$0xff] %v2291_v13  ;;  %v2301_v18 = vld [vmem:[%s350_s28 + $0x8] sm:$0xf]  ;;  %v2303_v19 = vld [vmem:[%s350_s28 + $0x8] sm:$0xf0] }
  0x1e   : > { %3026 = vst [vmem:[#allocation10_spill] sm:$0xff] %v2295_v15  ;;  %v2305_v20 = vld [vmem:[%s350_s28 + $0x10] sm:$0xf]  ;;  %v2307_v21 = vld [vmem:[%s350_s28 + $0x10] sm:$0xf0]  ;;  %398 = sbr.rel (%p1766_p9) target bundleno = 214 (0xd6), region = 52 }
  0x1f   : > { %v2309_v22 = vld [vmem:[%s350_s28 + $0x18] sm:$0xf]  ;;  %v2311_v23 = vld [vmem:[%s350_s28 + $0x18] sm:$0xf0]  ;;  %v2313_v24 = vld [vmem:[%s350_s28 + $0x20] sm:$0xf] }
  0x20   : > { %v2315_v25 = vld [vmem:[%s350_s28 + $0x20] sm:$0xf0]  ;;  %v2317_v26 = vld [vmem:[%s350_s28 + $0x28] sm:$0xf]  ;;  %v2319_v27 = vld [vmem:[%s350_s28 + $0x28] sm:$0xf0] }
  0x21   : > { %v2321_v28 = vld [vmem:[%s350_s28 + $0x30] sm:$0xf]  ;;  %v2323_v29 = vld [vmem:[%s350_s28 + $0x30] sm:$0xf0]  ;;  %v2325_v30 = vld [vmem:[%s350_s28 + $0x38] sm:$0xf] }
  0x22   : > { %v2327_v31 = vld [vmem:[%s350_s28 + $0x38] sm:$0xf0] }
  0x23   : > { %v1901_v32 = vld [vmem:[%s3013_s2 + $0x18] sm:$0xff]  ;;  %vm550_vm0 = vcmask 7168   ;;  %v2162_v33 = vmov -inf   ;;  %v1900_v34 = vld [vmem:[%s3013_s2 + $0x10] sm:$0xff]  ;;  %v1899_v35 = vld [vmem:[%s3013_s2 + $0x8] sm:$0xff]  ;;  %v399_v37 = vpack.c.bf16 %v2264_v1, %v2262_v0  ;;  %v401_v38 = vpack.c.bf16 %v2272_v5, %v2270_v4 }
  0x24   : > { %551 = vst.msk [vmem:[#allocation3] sm:$0xff] %vm550_vm0, %v2162_v33  ;;  %472 = vmatpush.bf16.msra.mxu0 %v1901_v32  ;;  %1914 = vmatpush.bf16.msra.mxu1 %v1901_v32  ;;  %v1898_v36 = vld [vmem:[%s3013_s2] sm:$0xff]  ;;  %vm443_vm1 = vcmask 523264   ;;  %v403_v39 = vpack.c.bf16 %v2280_v9, %v2278_v8  ;;  %v405_v40 = vpack.c.bf16 %v2291_v13, %v2289_v12  ;;  %v2163_v41 = vmov 0.0  }
  0x25   : > { %552 = vst.msk [vmem:[#allocation3 + $0x8] sm:$0xff] %vm550_vm0, %v2162_v33  ;;  %1915 = vmatpush.bf16.msra.mxu2 %v1901_v32  ;;  %1916 = vmatpush.bf16.msra.mxu3 %v1901_v32  ;;  %v400_v42 = vpack.c.bf16 %v2268_v3, %v2266_v2  ;;  %v402_v43 = vpack.c.bf16 %v2276_v7, %v2274_v6  ;;  %v2002_v46 = vld [vmem:[%s3014_s3] ss:$0 sm:$0xff]  ;;  %vm533_vm2 = vcmask 519168  }
  0x26   : > { %553 = vst.msk [vmem:[#allocation3 + $0x10] sm:$0xff] %vm550_vm0, %v2162_v33  ;;  %v404_v44 = vpack.c.bf16 %v2284_v11, %v2282_v10  ;;  %v406_v45 = vpack.c.bf16 %v2295_v15, %v2293_v14 }
  0x27   : > { %554 = vst.msk [vmem:[#allocation3 + $0x18] sm:$0xff] %vm550_vm0, %v2162_v33 }
  0x28   : > { %555 = vst.msk [vmem:[#allocation3 + $0x20] sm:$0xff] %vm550_vm0, %v2162_v33  ;;  %473 = vmatpush.bf16.msra.mxu0 %v1900_v34  ;;  %1917 = vmatpush.bf16.msra.mxu1 %v1900_v34 }
  0x29   : > { %556 = vst.msk [vmem:[#allocation3 + $0x28] sm:$0xff] %vm550_vm0, %v2162_v33  ;;  %1918 = vmatpush.bf16.msra.mxu2 %v1900_v34  ;;  %1919 = vmatpush.bf16.msra.mxu3 %v1900_v34 }
  0x2a   : > { %557 = vst.msk [vmem:[#allocation3 + $0x30] sm:$0xff] %vm550_vm0, %v2162_v33 }
  0x2b   : > { %558 = vst.msk [vmem:[#allocation3 + $0x38] sm:$0xff] %vm550_vm0, %v2162_v33 }
  0x2c   : > { %559 = vst.msk [vmem:[#allocation3 + $0x40] sm:$0xff] %vm550_vm0, %v2162_v33  ;;  %474 = vmatpush.bf16.msra.mxu0 %v1899_v35  ;;  %1920 = vmatpush.bf16.msra.mxu1 %v1899_v35 }
  0x2d   : > { %560 = vst.msk [vmem:[#allocation3 + $0x48] sm:$0xff] %vm550_vm0, %v2162_v33  ;;  %1921 = vmatpush.bf16.msra.mxu2 %v1899_v35  ;;  %1922 = vmatpush.bf16.msra.mxu3 %v1899_v35 }
  0x2e   : > { %561 = vst.msk [vmem:[#allocation3 + $0x50] sm:$0xff] %vm550_vm0, %v2162_v33 }
  0x2f   : > { %562 = vst.msk [vmem:[#allocation3 + $0x58] sm:$0xff] %vm550_vm0, %v2162_v33 }
  0x30   : > { %563 = vst.msk [vmem:[#allocation3 + $0x60] sm:$0xff] %vm550_vm0, %v2162_v33  ;;  %475 = vmatpush.bf16.msra.mxu0 %v1898_v36  ;;  %1923 = vmatpush.bf16.msra.mxu1 %v1898_v36 }
  0x31   : > { %564 = vst.msk [vmem:[#allocation3 + $0x68] sm:$0xff] %vm550_vm0, %v2162_v33  ;;  %1924 = vmatpush.bf16.msra.mxu2 %v1898_v36  ;;  %1925 = vmatpush.bf16.msra.mxu3 %v1898_v36 }
  0x32   : > { %565 = vst.msk [vmem:[#allocation3 + $0x70] sm:$0xff] %vm550_vm0, %v2162_v33 }
  0x33   : > { %566 = vst.msk [vmem:[#allocation3 + $0x78] sm:$0xff] %vm550_vm0, %v2162_v33  ;;  %1783 = vmatmul.msk.bf16.vlgmr.msra.gmra.mxu0 %vm443_vm1, %v399_v37  ;;  %1785 = vmatmul.msk.bf16.vlgmr.msra.gmra.mxu1 %vm443_vm1, %v401_v38 }
  0x34   : > { %567 = vst.msk [vmem:[#allocation4] sm:$0xff] %vm550_vm0, %v2163_v41  ;;  %1787 = vmatmul.msk.bf16.vlgmr.msra.gmra.mxu2 %vm443_vm1, %v403_v39  ;;  %1789 = vmatmul.msk.bf16.vlgmr.msra.gmra.mxu3 %vm443_vm1, %v405_v40 }
  0x35   : > { %568 = vst.msk [vmem:[#allocation4 + $0x8] sm:$0xff] %vm550_vm0, %v2163_v41 }
  0x36   : > { %569 = vst.msk [vmem:[#allocation4 + $0x10] sm:$0xff] %vm550_vm0, %v2163_v41 }
  0x37   : > { %570 = vst.msk [vmem:[#allocation4 + $0x18] sm:$0xff] %vm550_vm0, %v2163_v41 }
  0x38   : > { %571 = vst.msk [vmem:[#allocation4 + $0x20] sm:$0xff] %vm550_vm0, %v2163_v41 }
  0x39   : > { %572 = vst.msk [vmem:[#allocation4 + $0x28] sm:$0xff] %vm550_vm0, %v2163_v41 }
  0x3a   : > { %573 = vst.msk [vmem:[#allocation4 + $0x30] sm:$0xff] %vm550_vm0, %v2163_v41 }
  0x3b   : > { %574 = vst.msk [vmem:[#allocation4 + $0x38] sm:$0xff] %vm550_vm0, %v2163_v41 }
  0x3c   : > { %575 = vst.msk [vmem:[#allocation4 + $0x40] sm:$0xff] %vm550_vm0, %v2163_v41 }
  0x3d   : > { %576 = vst.msk [vmem:[#allocation4 + $0x48] sm:$0xff] %vm550_vm0, %v2163_v41 }
  0x3e   : > { %577 = vst.msk [vmem:[#allocation4 + $0x50] sm:$0xff] %vm550_vm0, %v2163_v41 }
  0x3f   : > { %578 = vst.msk [vmem:[#allocation4 + $0x58] sm:$0xff] %vm550_vm0, %v2163_v41 }
  0x40   : > { %579 = vst.msk [vmem:[#allocation4 + $0x60] sm:$0xff] %vm550_vm0, %v2163_v41 }
  0x41   : > { %580 = vst.msk [vmem:[#allocation4 + $0x68] sm:$0xff] %vm550_vm0, %v2163_v41 }
  0x42   : > { %581 = vst.msk [vmem:[#allocation4 + $0x70] sm:$0xff] %vm550_vm0, %v2163_v41 }
  0x43   : > { %582 = vst.msk [vmem:[#allocation4 + $0x78] sm:$0xff] %vm550_vm0, %v2163_v41  ;;  %1784 = vmatmul.msk.bf16.gmra.mxu0 %vm443_vm1, %v400_v42  ;;  %1786 = vmatmul.msk.bf16.gmra.mxu1 %vm443_vm1, %v402_v43 }
  0x44   : > { %583 = vst.msk [vmem:[#allocation5] sm:$0xff] %vm443_vm1, %v2163_v41  ;;  %1788 = vmatmul.msk.bf16.gmra.mxu2 %vm443_vm1, %v404_v44  ;;  %1790 = vmatmul.msk.bf16.gmra.mxu3 %vm443_vm1, %v406_v45 }
  0x45   : > { %584 = vst.msk [vmem:[#allocation5 + $0x8] sm:$0xff] %vm443_vm1, %v2163_v41 }
  0x46   : > { %585 = vst.msk [vmem:[#allocation5 + $0x10] sm:$0xff] %vm443_vm1, %v2163_v41 }
  0x47   : > { %586 = vst.msk [vmem:[#allocation5 + $0x18] sm:$0xff] %vm443_vm1, %v2163_v41 }
  0x48   : > { %587 = vst.msk [vmem:[#allocation5 + $0x20] sm:$0xff] %vm443_vm1, %v2163_v41 }
  0x49   : > { %588 = vst.msk [vmem:[#allocation5 + $0x28] sm:$0xff] %vm443_vm1, %v2163_v41 }
  0x4a   : > { %589 = vst.msk [vmem:[#allocation5 + $0x30] sm:$0xff] %vm443_vm1, %v2163_v41 }
  0x4b   : > { %590 = vst.msk [vmem:[#allocation5 + $0x38] sm:$0xff] %vm443_vm1, %v2163_v41 }
  0x4c   : > { %591 = vst.msk [vmem:[#allocation5 + $0x40] sm:$0xff] %vm443_vm1, %v2163_v41 }
  0x4d   : > { %592 = vst.msk [vmem:[#allocation5 + $0x48] sm:$0xff] %vm443_vm1, %v2163_v41 }
  0x4e   : > { %593 = vst.msk [vmem:[#allocation5 + $0x50] sm:$0xff] %vm443_vm1, %v2163_v41 }
  0x4f   : > { %594 = vst.msk [vmem:[#allocation5 + $0x58] sm:$0xff] %vm443_vm1, %v2163_v41 }
  0x50   : > { %595 = vst.msk [vmem:[#allocation5 + $0x60] sm:$0xff] %vm443_vm1, %v2163_v41 }
  0x51   : > { %596 = vst.msk [vmem:[#allocation5 + $0x68] sm:$0xff] %vm443_vm1, %v2163_v41 }
  0x52   : > { %597 = vst.msk [vmem:[#allocation5 + $0x70] sm:$0xff] %vm443_vm1, %v2163_v41 }
  0x53   : > { %598 = vst.msk [vmem:[#allocation5 + $0x78] sm:$0xff] %vm443_vm1, %v2163_v41 }
  0xb0   : > { %v477_v47 = vpop.f32.mrf.mxu0  ;;  %v487_v48 = vpop.f32.mrf.mxu1 }
  0xb1   : > { %v478_v49 = vadd.f32 %v2002_v46, %v477_v47  ;;  %v488_v50 = vadd.f32 %v2002_v46, %v487_v48 }
  0xb3   : > { %v517_v51 = vpack.c.bf16 %v478_v49, %v478_v49  ;;  %v521_v52 = vpack.c.bf16 %v488_v50, %v488_v50 }
  0xb5   : > { %534 = vst.msk [vmem:[#allocation2] sm:$0xf] %vm533_vm2, %v517_v51 }
  0xb6   : > { %538 = vst.msk [vmem:[#allocation2 + $0x10] sm:$0xf] %vm533_vm2, %v521_v52 }
  0xb7   : > { %v497_v53 = vpop.f32.mrf.mxu2  ;;  %v507_v54 = vpop.f32.mrf.mxu3 }
  0xb8   : > { %v498_v55 = vadd.f32 %v2002_v46, %v497_v53  ;;  %v508_v56 = vadd.f32 %v2002_v46, %v507_v54  ;;  %v479_v57 = vpop.f32.mrf.mxu0  ;;  %v489_v58 = vpop.f32.mrf.mxu1 }
  0xb9   : > { %v480_v59 = vadd.f32 %v2002_v46, %v479_v57  ;;  %v490_v60 = vadd.f32 %v2002_v46, %v489_v58 }
  0xba   : > { %v525_v61 = vpack.c.bf16 %v498_v55, %v498_v55  ;;  %v529_v62 = vpack.c.bf16 %v508_v56, %v508_v56 }
  0xbb   : > { %v518_v63 = vpack.c.bf16 %v480_v59, %v480_v59  ;;  %v522_v32 = vpack.c.bf16 %v490_v60, %v490_v60 }
  0xbc   : > { %542 = vst.msk [vmem:[#allocation2 + $0x20] sm:$0xf] %vm533_vm2, %v525_v61 }
  0xbd   : > { %546 = vst.msk [vmem:[#allocation2 + $0x30] sm:$0xf] %vm533_vm2, %v529_v62 }
  0xbe   : > { %535 = vst.msk [vmem:[#allocation2 + $0x4] sm:$0xf] %vm533_vm2, %v518_v63 }
  0xbf   : > { %539 = vst.msk [vmem:[#allocation2 + $0x14] sm:$0xf] %vm533_vm2, %v522_v32  ;;  %v499_v33 = vpop.f32.mrf.mxu2  ;;  %v509_v34 = vpop.f32.mrf.mxu3 }
  0xc0   : > { %v500_v35 = vadd.f32 %v2002_v46, %v499_v33  ;;  %v510_v36 = vadd.f32 %v2002_v46, %v509_v34  ;;  %v482_v37 = vpop.f32.mrf.mxu0  ;;  %v492_v38 = vpop.f32.mrf.mxu1 }
  0xc1   : > { %v483_v39 = vadd.f32 %v2002_v46, %v482_v37  ;;  %v493_v40 = vadd.f32 %v2002_v46, %v492_v38 }
  0xc2   : > { %v526_v41 = vpack.c.bf16 %v500_v35, %v500_v35  ;;  %v530_v42 = vpack.c.bf16 %v510_v36, %v510_v36 }
  0xc3   : > { %v519_v43 = vpack.c.bf16 %v483_v39, %v483_v39  ;;  %v523_v44 = vpack.c.bf16 %v493_v40, %v493_v40 }
  0xc4   : > { %543 = vst.msk [vmem:[#allocation2 + $0x24] sm:$0xf] %vm533_vm2, %v526_v41 }
  0xc5   : > { %547 = vst.msk [vmem:[#allocation2 + $0x34] sm:$0xf] %vm533_vm2, %v530_v42 }
  0xc6   : > { %536 = vst.msk [vmem:[#allocation2 + $0x8] sm:$0xf] %vm533_vm2, %v519_v43 }
  0xc7   : > { %540 = vst.msk [vmem:[#allocation2 + $0x18] sm:$0xf] %vm533_vm2, %v523_v44  ;;  %v502_v45 = vpop.f32.mrf.mxu2  ;;  %v512_v47 = vpop.f32.mrf.mxu3 }
  0xc8   : > { %v503_v48 = vadd.f32 %v2002_v46, %v502_v45  ;;  %v513_v49 = vadd.f32 %v2002_v46, %v512_v47  ;;  %v484_v50 = vpop.f32.mrf.mxu0  ;;  %v494_v51 = vpop.f32.mrf.mxu1 }
  0xc9   : > { %v485_v52 = vadd.f32 %v2002_v46, %v484_v50  ;;  %v495_v53 = vadd.f32 %v2002_v46, %v494_v51 }
  0xca   : > { %v527_v54 = vpack.c.bf16 %v503_v48, %v503_v48  ;;  %v531_v55 = vpack.c.bf16 %v513_v49, %v513_v49 }
  0xcb   : > { %v520_v56 = vpack.c.bf16 %v485_v52, %v485_v52  ;;  %v524_v57 = vpack.c.bf16 %v495_v53, %v495_v53 }
  0xcc   : > { %544 = vst.msk [vmem:[#allocation2 + $0x28] sm:$0xf] %vm533_vm2, %v527_v54 }
  0xcd   : > { %548 = vst.msk [vmem:[#allocation2 + $0x38] sm:$0xf] %vm533_vm2, %v531_v55 }
  0xce   : > { %537 = vst.msk [vmem:[#allocation2 + $0xc] sm:$0xf] %vm533_vm2, %v520_v56 }
  0xcf   : > { %541 = vst.msk [vmem:[#allocation2 + $0x1c] sm:$0xf] %vm533_vm2, %v524_v57  ;;  %v504_v58 = vpop.f32.mrf.mxu2  ;;  %v514_v59 = vpop.f32.mrf.mxu3 }
  0xd0   : > { %v505_v60 = vadd.f32 %v2002_v46, %v504_v58  ;;  %v515_v61 = vadd.f32 %v2002_v46, %v514_v59 }
  0xd2   : > { %v528_v62 = vpack.c.bf16 %v505_v60, %v505_v60  ;;  %v532_v63 = vpack.c.bf16 %v515_v61, %v515_v61 }
  0xd4   : > { %545 = vst.msk [vmem:[#allocation2 + $0x2c] sm:$0xf] %vm533_vm2, %v528_v62 }
  0xd5   : > { %549 = vst.msk [vmem:[#allocation2 + $0x3c] sm:$0xf] %vm533_vm2, %v532_v63 }
  0xd6 PF: > { %v2435_v32 = vor.u32 %v2327_v31, %v2325_v30  ;;  %vm675_vm3 = vcmask 523264   ;;  %v1818_v46 = vor.u32 %v2323_v29, %v2321_v28  ;;  %v1814_v35 = vor.u32 %v2319_v27, %v2317_v26  ;;  %v1906_v37 = vld [vmem:[#allocation2] sm:$0xff]  ;;  %v1908_v38 = vld [vmem:[#allocation2 + $0x10] sm:$0xff]  ;;  %v1909_v40 = vld [vmem:[#allocation2 + $0x18] sm:$0xff]  ;;  %p1887_p10 = scmp.ne.s32.totalorder %s2136_s26, 1 }
  0xd7   : > { %v1810_v30 = vor.u32 %v2315_v25, %v2313_v24  ;;  %v1806_v28 = vor.u32 %v2311_v23, %v2309_v22  ;;  %v1802_v26 = vor.u32 %v2307_v21, %v2305_v20  ;;  %v1798_v24 = vor.u32 %v2303_v19, %v2301_v18  ;;  %v1907_v20 = vld [vmem:[#allocation2 + $0x8] sm:$0xff]  ;;  %v1905_v18 = vld [vmem:[%s3015_s4 + $0x18] sm:$0xff]  ;;  %v1902_v21 = vld [vmem:[%s3015_s4] sm:$0xff]  ;;  %s1588_s26 = sld [smem:[#allocation6]] (!%p1887_p10) }
  0xd8   : > { %v698_v33 = vsel %vm675_vm3, %v2435_v32, 0  ;;  %v695_v34 = vsel %vm675_vm3, %v1818_v46, 0  ;;  %v692_v36 = vsel %vm675_vm3, %v1814_v35, 0  ;;  %v1794_v22 = vor.u32 %v2299_v17, %v2297_v16  ;;  %704 = vmatpush.bf16.msra.mxu0 %v1905_v18  ;;  %v1904_v16 = vld [vmem:[%s3015_s4 + $0x10] sm:$0xff]  ;;  %v1903_v17 = vld [vmem:[%s3015_s4 + $0x8] sm:$0xff]  ;;  %v1910_v41 = vld [vmem:[#allocation2 + $0x20] sm:$0xff] }
  0xd9   : > { %829 = vmatpush.bf16.xpose.msra.mxu1 %v698_v33  ;;  %1926 = vmatpush.bf16.xpose.msra.mxu3 %v698_v33  ;;  %v689_v31 = vsel %vm675_vm3, %v1810_v30, 0  ;;  %v686_v29 = vsel %vm675_vm3, %v1806_v28, 0  ;;  %v683_v27 = vsel %vm675_vm3, %v1802_v26, 0  ;;  %v680_v25 = vsel %vm675_vm3, %v1798_v24, 0  ;;  %v1912_v39 = vld [vmem:[#allocation2 + $0x30] sm:$0xff]  ;;  %v2573_v18 = vld [vmem:[#allocation3 + $0x18] sm:$0xff] }
  0xda   : > { %v677_v23 = vsel %vm675_vm3, %v1794_v22, 0  ;;  %v2164_v63 = vmov 0   ;;  %vm1198_vm4 = vcmask 7168   ;;  %v2606_v15 = vld [vmem:[#allocation3 + $0x30] sm:$0xff] }
  0xdb   : > { %v1911_v19 = vld [vmem:[#allocation2 + $0x28] sm:$0xff]  ;;  %2004 = vset.pattern.permute.xlu0 %v2164_v63  ;;  %2003 = vset.pattern.permute.xlu1 %v2164_v63 }
  0xdc   : > { %705 = vmatpush.bf16.msra.mxu0 %v1904_v16  ;;  %v1913_v47 = vld [vmem:[#allocation2 + $0x38] sm:$0xff]  ;;  %2005 = vset.pattern.permute.xlu2 %v2164_v63  ;;  %v2006_v63 = vld [vmem:[%s3016_s5] ss:$0 sm:$0xff] }
  0xe0   : > { %706 = vmatpush.bf16.msra.mxu0 %v1903_v17 }
  0xe1   : > { %830 = vmatpush.bf16.xpose.msra.mxu1 %v695_v34  ;;  %1927 = vmatpush.bf16.xpose.msra.mxu3 %v695_v34  ;;  %v2543_v34 = vld [vmem:[#allocation3] sm:$0xff] }
  0xe4   : > { %707 = vmatpush.bf16.msra.mxu0 %v1902_v21 }
  0xe7   : > { %1839 = vmatmul.msk.bf16.vlgmr.msra.gmra.mxu0 %vm675_vm3, %v1794_v22 }
  0xe9   : > { %831 = vmatpush.bf16.xpose.msra.mxu1 %v692_v36  ;;  %1928 = vmatpush.bf16.xpose.msra.mxu3 %v692_v36 }
  0xf1   : > { %832 = vmatpush.bf16.xpose.msra.mxu1 %v689_v31  ;;  %1929 = vmatpush.bf16.xpose.msra.mxu3 %v689_v31 }
  0xf7   : > { %1840 = vmatmul.msk.bf16.gmra.mxu0 %vm675_vm3, %v1798_v24 }
  0xf9   : > { %833 = vmatpush.bf16.xpose.msra.mxu1 %v686_v29  ;;  %1930 = vmatpush.bf16.xpose.msra.mxu3 %v686_v29 }
 0x101   : > { %834 = vmatpush.bf16.xpose.msra.mxu1 %v683_v27  ;;  %1931 = vmatpush.bf16.xpose.msra.mxu3 %v683_v27 }
 0x107   : > { %1841 = vmatmul.msk.bf16.gmra.mxu0 %vm675_vm3, %v1802_v26 }
 0x109   : > { %835 = vmatpush.bf16.xpose.msra.mxu1 %v680_v25  ;;  %1932 = vmatpush.bf16.xpose.msra.mxu3 %v680_v25  ;;  %v2563_v25 = vld [vmem:[#allocation3 + $0x10] sm:$0xff] }
 0x111   : > { %836 = vmatpush.bf16.xpose.msra.mxu1 %v677_v23  ;;  %1933 = vmatpush.bf16.xpose.msra.mxu3 %v677_v23 }
 0x117   : > { %1842 = vmatmul.msk.bf16.gmra.mxu0 %vm675_vm3, %v1806_v28  ;;  %v2553_v28 = vld [vmem:[#allocation3 + $0x8] sm:$0xff] }
 0x118   : > { %1879 = vmatmul.msk.bf16.vlgmr.msra.gmra.mxu1 %vm675_vm3, %v1906_v37  ;;  %1884 = vmatmul.msk.bf16.vlgmr.msra.gmra.mxu3 %vm675_vm3, %v1911_v19 }
 0x127   : > { %1843 = vmatmul.msk.bf16.gmra.mxu0 %vm675_vm3, %v1810_v30 }
 0x128   : > { %1880 = vmatmul.msk.bf16.gmra.mxu1 %vm675_vm3, %v1907_v20  ;;  %1885 = vmatmul.msk.bf16.gmra.mxu3 %vm675_vm3, %v1912_v39 }
 0x137   : > { %1844 = vmatmul.msk.bf16.gmra.mxu0 %vm675_vm3, %v1814_v35 }
 0x138   : > { %1881 = vmatmul.msk.bf16.gmra.mxu1 %vm675_vm3, %v1908_v38  ;;  %1886 = vmatmul.msk.bf16.gmra.mxu3 %vm675_vm3, %v1913_v47  ;;  %v2583_v38 = vld [vmem:[#allocation3 + $0x20] sm:$0xff] }
 0x147   : > { %1845 = vmatmul.msk.bf16.gmra.mxu0 %vm675_vm3, %v1818_v46 }
 0x148   : > { %1882 = vmatmul.msk.bf16.gmra.mxu1 %vm675_vm3, %v1909_v40 }
 0x157   : > { %1846 = vmatmul.msk.bf16.gmra.mxu0 %vm675_vm3, %v2435_v32 }
 0x158   : > { %1883 = vmatmul.msk.bf16.gmra.mxu1 %vm675_vm3, %v1910_v41 }
 0x164   : > { %v2504_v49 = vpop.f32.mrf.mxu0 }
 0x16c   : > { %v2509_v51 = vpop.f32.mrf.mxu0 }
 0x174   : > { %v2516_v54 = vpop.f32.mrf.mxu0 }
 0x17c   : > { %v2524_v57 = vpop.f32.mrf.mxu0 }
 0x184   : > { %v2532_v60 = vpop.f32.mrf.mxu0 }
 0x18c   : > { %v2535_v61 = vpop.f32.mrf.mxu0 }
 0x194   : > { %v2537_v62 = vpop.f32.mrf.mxu0 }
 0x195   : > { %v2485_v42 = vpop.f32.mrf.mxu1  ;;  %v725_v47 = vadd.f32 %v2006_v63, %v2537_v62 }
 0x196   : > { %894 = vmax.xlane.f32.xlu0 %v2485_v42 }
 0x19b   : > { %v2511_v52 = vpop.f32.mrf.mxu3 }
 0x19c   : > { %v726_v32 = vpop.f32.mrf.mxu0 }
 0x19d   : > { %v2489_v43 = vpop.f32.mrf.mxu1  ;;  %v727_v13 = vadd.f32 %v2006_v63, %v726_v32 }
 0x19e   : > { %896 = vmax.xlane.f32.xlu0 %v2489_v43 }
 0x19f   : > { %v1338_v62 = vpack.c.bf16 %v727_v13, %v725_v47  ;;  %v715_v13 = vadd.f32 %v2006_v63, %v2516_v54 }
 0x1a3   : > { %v2518_v55 = vpop.f32.mrf.mxu3 }
 0x1a4   : > { %v2539_v33 = vpop.f32.mrf.mxu0 }
 0x1a5   : > { %v2492_v44 = vpop.f32.mrf.mxu1 }
 0x1a6   : > { %898 = vmax.xlane.f32.xlu1 %v2492_v44 }
 0x1ab   : > { %v2526_v58 = vpop.f32.mrf.mxu3 }
 0x1ac   : > { %v2541_v46 = vpop.f32.mrf.mxu0 }
 0x1ad   : > { %v2497_v45 = vpop.f32.mrf.mxu1 }
 0x1ae   : > { %900 = vmax.xlane.f32.xlu1 %v2497_v45 }
 0x1b4   : > { %v734_v30 = vpop.f32.mrf.mxu0 }
 0x1b5   : > { %v2501_v48 = vpop.f32.mrf.mxu1  ;;  %v735_v12 = vadd.f32 %v2006_v63, %v734_v30 }
 0x1b6   : > { %902 = vmax.xlane.f32.xlu2 %v2501_v48 }
 0x1bc   : > { %v736_v27 = vpop.f32.mrf.mxu0 }
 0x1bd   : > { %v2506_v50 = vpop.f32.mrf.mxu1 }
 0x1be   : > { %904 = vmax.xlane.f32.xlu2 %v2506_v50 }
 0x1c4   : > { %v739_v37 = vpop.f32.mrf.mxu0 }
 0x1c5   : > { %v2513_v53 = vpop.f32.mrf.mxu1  ;;  %v740_v20 = vadd.f32 %v2006_v63, %v739_v37  ;;  %v737_v37 = vadd.f32 %v2006_v63, %v736_v27  ;;  %v2623_v27 = vld [vmem:[#allocation3 + $0x38] sm:$0xff] }
 0x1c6   : > { %906 = vmax.xlane.f32.xlu0 %v2513_v53 }
 0x1cc   : > { %v741_v17 = vpop.f32.mrf.mxu0 }
 0x1cd   : > { %v2520_v56 = vpop.f32.mrf.mxu1  ;;  %v742_v21 = vadd.f32 %v2006_v63, %v741_v17 }
 0x1ce   : > { %908 = vmax.xlane.f32.xlu1 %v2520_v56  ;;  %916 = vmax.xlane.f32.xlu0 %v2518_v55 }
 0x1d4   : > { %v744_v41 = vpop.f32.mrf.mxu0 }
 0x1d5   : > { %v2528_v59 = vpop.f32.mrf.mxu1 }
 0x1d6   : > { %910 = vmax.xlane.f32.xlu2 %v2528_v59  ;;  %918 = vmax.xlane.f32.xlu0 %v2526_v58 }
 0x1dd   : > { %v2620_v30 = vpop.f32.mrf.mxu1 }
 0x1de   : > { %914 = vmax.xlane.f32.xlu2 %v2511_v52 }
 0x209   : > { %v895_v35 = vpop.xlane.xlu0 %894 }
 0x20a   : > { %v2546_v36 = vmax.f32 %v2543_v34, %v895_v35  ;;  %v2596_v35 = vld [vmem:[#allocation3 + $0x28] sm:$0xff] }
 0x20c   : > { %1424 = vst.msk [vmem:[#allocation3] sm:$0xff] %vm1198_vm4, %v2546_v36  ;;  %992 = vperm.xlu0 %2004, %v2546_v36  }
 0x211   : > { %v897_v29 = vpop.xlane.xlu0 %896 }
 0x212   : > { %v2556_v26 = vmax.f32 %v2553_v28, %v897_v29 }
 0x214   : > { %1425 = vst.msk [vmem:[#allocation3 + $0x8] sm:$0xff] %vm1198_vm4, %v2556_v26  ;;  %997 = vperm.xlu1 %2003, %v2556_v26  }
 0x219   : > { %v899_v22 = vpop.xlane.xlu1 %898 }
 0x21a   : > { %v2566_v23 = vmax.f32 %v2563_v25, %v899_v22  ;;  %v745_v22 = vadd.f32 %v2006_v63, %v744_v41  ;;  %v1341_v41 = vpack.c.bf16 %v742_v21, %v740_v20  ;;  %v717_v21 = vadd.f32 %v2006_v63, %v2524_v57 }
 0x21c   : > { %1426 = vst.msk [vmem:[#allocation3 + $0x10] sm:$0xff] %vm1198_vm4, %v2566_v23  ;;  %1002 = vperm.xlu2 %2005, %v2566_v23   ;;  %v1336_v57 = vpack.c.bf16 %v717_v21, %v715_v13 }
 0x221   : > { %v901_v19 = vpop.xlane.xlu1 %900 }
 0x222   : > { %v2576_v16 = vmax.f32 %v2573_v18, %v901_v19 }
 0x224   : > { %1427 = vst.msk [vmem:[#allocation3 + $0x18] sm:$0xff] %vm1198_vm4, %v2576_v16  ;;  %1007 = vperm.xlu2 %2005, %v2576_v16  }
 0x229   : > { %v903_v39 = vpop.xlane.xlu2 %902 }
 0x22a   : > { %v2586_v40 = vmax.f32 %v2583_v38, %v903_v39  ;;  %v746_v39 = vpop.f32.mrf.mxu0 }
 0x22b   : > { %v747_v31 = vadd.f32 %v2006_v63, %v746_v39  ;;  %v722_v39 = vadd.f32 %v2006_v63, %v2535_v61  ;;  %v1340_v61 = vpack.c.bf16 %v737_v37, %v735_v12  ;;  %v2633_v12 = vld [vmem:[#allocation3 + $0x40] sm:$0xff]  ;;  %v710_v37 = vadd.f32 %v2006_v63, %v2504_v49 }
 0x22c   : > { %1428 = vst.msk [vmem:[#allocation3 + $0x20] sm:$0xff] %vm1198_vm4, %v2586_v40  ;;  %1012 = vperm.xlu2 %2005, %v2586_v40  }
 0x22d   : > { %v1342_v24 = vpack.c.bf16 %v747_v31, %v745_v22  ;;  %v730_v31 = vadd.f32 %v2006_v63, %v2539_v33  ;;  %v732_v22 = vadd.f32 %v2006_v63, %v2541_v46 }
 0x22f   : > { %1343 = vmatpush.bf16.msra.mxu2 %v1342_v24  ;;  %1934 = vmatpush.bf16.msrb.mxu3 %v1342_v24  ;;  %v1339_v33 = vpack.c.bf16 %v732_v22, %v730_v31  ;;  %v2651_v22 = vld [vmem:[#allocation3 + $0x50] sm:$0xff] }
 0x231   : > { %v905_v29 = vpop.xlane.xlu2 %904 }
 0x232   : > { %v2599_v19 = vmax.f32 %v2596_v35, %v905_v29  ;;  %v720_v29 = vadd.f32 %v2006_v63, %v2532_v60 }
 0x233   : > { %1344 = vmatpush.bf16.msra.mxu2 %v1341_v41  ;;  %1935 = vmatpush.bf16.msrb.mxu3 %v1341_v41 }
 0x234   : > { %1429 = vst.msk [vmem:[#allocation3 + $0x28] sm:$0xff] %vm1198_vm4, %v2599_v19  ;;  %1017 = vperm.xlu0 %2004, %v2599_v19   ;;  %v1337_v32 = vpack.c.bf16 %v722_v39, %v720_v29  ;;  %v2646_v39 = vld [vmem:[#allocation3 + $0x58] sm:$0xff] }
 0x237   : > { %1345 = vmatpush.bf16.msra.mxu2 %v1340_v61  ;;  %1936 = vmatpush.bf16.msrb.mxu3 %v1340_v61 }
 0x239   : > { %v907_v17 = vpop.xlane.xlu0 %906 }
 0x23a   : > { %v2612_v9 = vmax.f32 %v2606_v15, %v907_v17  ;;  %v712_v17 = vadd.f32 %v2006_v63, %v2509_v51  ;;  %v2658_v51 = vld [vmem:[#allocation3 + $0x60] sm:$0xff]  ;;  %v2662_v63 = vpop.f32.mrf.mxu3 }
 0x23b   : > { %1346 = vmatpush.bf16.msra.mxu2 %v1339_v33  ;;  %1937 = vmatpush.bf16.msrb.mxu3 %v1339_v33 }
 0x23c   : > { %1430 = vst.msk [vmem:[#allocation3 + $0x30] sm:$0xff] %vm1198_vm4, %v2612_v9 }
 0x23e   : > { %912 = vmax.xlane.f32.xlu1 %v2620_v30 }
 0x23f   : > { %1347 = vmatpush.bf16.msra.mxu2 %v1338_v62  ;;  %1938 = vmatpush.bf16.msrb.mxu3 %v1338_v62  ;;  %v1335_v62 = vpack.c.bf16 %v712_v17, %v710_v37 }
 0x241   : > { %v909_v46 = vpop.xlane.xlu1 %908  ;;  %v917_v54 = vpop.xlane.xlu0 %916 }
 0x242   : > { %v2626_v24 = vmax.f32 %v2623_v27, %v909_v46  ;;  %v2649_v31 = vmax.f32 %v2646_v39, %v917_v54  ;;  %v2670_v46 = vpop.f32.mrf.mxu3 }
 0x243   : > { %1348 = vmatpush.bf16.msra.mxu2 %v1337_v32  ;;  %1939 = vmatpush.bf16.msrb.mxu3 %v1337_v32 }
 0x244   : > { %1431 = vst.msk [vmem:[#allocation3 + $0x38] sm:$0xff] %vm1198_vm4, %v2626_v24  ;;  %1027 = vperm.xlu2 %2005, %v2626_v24  }
 0x245   : > { %1435 = vst.msk [vmem:[#allocation3 + $0x58] sm:$0xff] %vm1198_vm4, %v2649_v31 }
 0x247   : > { %1349 = vmatpush.bf16.msra.mxu2 %v1336_v57  ;;  %1940 = vmatpush.bf16.msrb.mxu3 %v1336_v57 }
 0x249   : > { %v911_v47 = vpop.xlane.xlu2 %910  ;;  %v919_v32 = vpop.xlane.xlu0 %918 }
 0x24a   : > { %v2638_v41 = vmax.f32 %v2633_v12, %v911_v47  ;;  %v2665_v33 = vmax.f32 %v2658_v51, %v919_v32  ;;  %v2673_v13 = vpop.f32.mrf.mxu3 }
 0x24b   : > { %1350 = vmatpush.bf16.msra.mxu2 %v1335_v62  ;;  %1941 = vmatpush.bf16.msrb.mxu3 %v1335_v62 }
 0x24c   : > { %1432 = vst.msk [vmem:[#allocation3 + $0x40] sm:$0xff] %vm1198_vm4, %v2638_v41 }
 0x24d   : > { %1436 = vst.msk [vmem:[#allocation3 + $0x60] sm:$0xff] %vm1198_vm4, %v2665_v33 }
 0x251   : > { %v915_v61 = vpop.xlane.xlu2 %914 }
 0x252   : > { %v2656_v49 = vmax.f32 %v2651_v22, %v915_v61 }
 0x254   : > { %1434 = vst.msk [vmem:[#allocation3 + $0x50] sm:$0xff] %vm1198_vm4, %v2656_v49 }
 0x257   : > { %1022 = vperm.xlu1 %2003, %v2612_v9  }
 0x25e   : > { %922 = vmax.xlane.f32.xlu0 %v2670_v46 }
 0x26d   : > { %924 = vmax.xlane.f32.xlu2 %v2673_v13 }
 0x272   : > { %1032 = vperm.xlu0 %2004, %v2638_v41  }
 0x276   : > { %v1003_v37 = vpop.permute.xlu2 %1002 }
 0x27e   : > { %v993_v21 = vpop.permute.xlu0 %992  ;;  %v1008_v62 = vpop.permute.xlu2 %1007 }
 0x27f   : > { %v1070_v47 = vsub.f32 %v2485_v42, %v993_v21  ;;  %v1073_v60 = vsub.f32 %v2497_v45, %v1008_v62  ;;  %v1072_v42 = vsub.f32 %v2492_v44, %v1003_v37  ;;  %v3028_v45 = vsub.f32 %v2583_v38, %v2586_v40 }
 0x281   : > { %920 = vmax.xlane.f32.xlu1 %v2662_v63  ;;  %v1086_v17 = vmul.f32 1.442695, %v1070_v47  ;;  %v1092_v21 = vmul.f32 1.442695, %v1073_v60 }
 0x283   : > { %2007 = vpow2.f32 %v1086_v17  ;;  %v1090_v17 = vmul.f32 1.442695, %v1072_v42 }
 0x286   : > { %v998_v54 = vpop.permute.xlu1 %997 }
 0x287   : > { %v1071_v57 = vsub.f32 %v2489_v43, %v998_v54  ;;  %v3027_v43 = vsub.f32 %v2553_v28, %v2556_v26 }
 0x289   : > { %v1088_v61 = vmul.f32 1.442695, %v1071_v57  ;;  %v2680_v32 = vpop.eup %2007  ;;  %v960_v47 = vmul.f32 1.442695, %v3027_v43  ;;  %v966_v57 = vmul.f32 1.442695, %v3028_v45 }
 0x28b   : > { %2009 = vpow2.f32 %v1088_v61  ;;  %v1013_v61 = vpop.permute.xlu2 %1012 }
 0x28c   : > { %2011 = vpow2.f32 %v1092_v21  ;;  %v1074_v28 = vsub.f32 %v2501_v48, %v1013_v61  ;;  %v952_v48 = vsub.f32 %v2651_v22, %v2656_v49 }
 0x28d   : > { %2013 = vpow2.f32 %v960_v47 }
 0x28e   : > { %2015 = vpow2.f32 %v1090_v17  ;;  %v1094_v38 = vmul.f32 1.442695, %v1074_v28  ;;  %v978_v47 = vmul.f32 1.442695, %v952_v48 }
 0x28f   : > { %2017 = vpow2.f32 %v966_v57 }
 0x291   : > { %v2682_v29 = vpop.eup %2009 }
 0x292   : > { %v1327_v20 = vpack.c.bf16 %v2682_v29, %v2680_v32  ;;  %v2692_v54 = vpop.eup %2011 }
 0x293   : > { %v2697_v44 = vpop.eup %2013 }
 0x294   : > { %1351 = vmatmul.bf16.vlgmr.msra.gmra.mxu2 %v1327_v20  ;;  %v2699_v60 = vpop.eup %2015  ;;  %v3029_v20 = vsub.f32 %v2623_v27, %v2626_v24  ;;  %v2716_v27 = vld [vmem:[#allocation3 + $0x48] sm:$0xff] }
 0x295   : > { %v1328_v26 = vpack.c.bf16 %v2692_v54, %v2699_v60  ;;  %v2709_v42 = vpop.eup %2017 }
 0x296   : > { %v972_v37 = vmul.f32 1.442695, %v3029_v20 }
 0x298   : > { %2019 = vpow2.f32 %v972_v37 }
 0x299   : > { %2021 = vpow2.f32 %v1094_v38 }
 0x29a   : > { %1047 = vperm.xlu1 %2003, %v2649_v31  }
 0x29e   : > { %v2714_v43 = vpop.eup %2019  ;;  %v1028_v28 = vpop.permute.xlu2 %1027 }
 0x29f   : > { %v2718_v24 = vpop.eup %2021 }
 0x2a2   : > { %1238 = vperm.xlu1 %2003, %v2697_v44  }
 0x2a4   : > { %1356 = vmatmul.bf16.gmra.mxu2 %v1328_v26  ;;  %v1077_v26 = vsub.f32 %v2520_v56, %v1028_v28 }
 0x2a6   : > { %v1018_v40 = vpop.permute.xlu0 %1017  ;;  %v1100_v20 = vmul.f32 1.442695, %v1077_v26 }
 0x2a7   : > { %v1075_v62 = vsub.f32 %v2506_v50, %v1018_v40 }
 0x2a9   : > { %v1096_v21 = vmul.f32 1.442695, %v1075_v62  ;;  %v2740_v62 = vld [vmem:[#allocation3 + $0x70] sm:$0xff] }
 0x2aa   : > { %1253 = vperm.xlu1 %2003, %v2709_v42  }
 0x2ab   : > { %2023 = vpow2.f32 %v1096_v21 }
 0x2ac   : > { %2025 = vpow2.f32 %v978_v47 }
 0x2ad   : > { %2027 = vpow2.f32 %v1100_v20  ;;  %v3031_v20 = vsub.f32 %v2573_v18, %v2576_v16  ;;  %v954_v16 = vsub.f32 %v2658_v51, %v2665_v33 }
 0x2b1   : > { %v2720_v17 = vpop.eup %2023  ;;  %v913_v50 = vpop.xlane.xlu1 %912 }
 0x2b2   : > { %v2723_v45 = vmax.f32 %v2716_v27, %v913_v50  ;;  %1268 = vperm.xlu1 %2003, %v2714_v43   ;;  %v1329_v57 = vpack.c.bf16 %v2720_v17, %v2718_v24  ;;  %v2733_v61 = vpop.eup %2025  ;;  %v3030_v50 = vsub.f32 %v2543_v34, %v2546_v36  ;;  %v964_v34 = vmul.f32 1.442695, %v3031_v20 }
 0x2b3   : > { %v2745_v47 = vpop.eup %2027 }
 0x2b4   : > { %v951_v22 = vsub.f32 %v2716_v27, %v2723_v45  ;;  %1433 = vst.msk [vmem:[#allocation3 + $0x48] sm:$0xff] %vm1198_vm4, %v2723_v45  ;;  %1037 = vperm.xlu0 %2004, %v2723_v45   ;;  %1361 = vmatmul.bf16.gmra.mxu2 %v1329_v57  ;;  %v2756_v27 = vld [vmem:[#allocation3 + $0x78] sm:$0xff]  ;;  %v958_v45 = vmul.f32 1.442695, %v3030_v50 }
 0x2ba   : > { %1283 = vperm.xlu1 %2003, %v2733_v61  }
 0x2bc   : > { %1042 = vperm.xlu0 %2004, %v2656_v49  }
 0x2c4   : > { %1052 = vperm.xlu0 %2004, %v2665_v33  }
 0x2c9   : > { %v1023_v37 = vpop.permute.xlu1 %1022 }
 0x2ca   : > { %v1076_v38 = vsub.f32 %v2513_v53, %v1023_v37  ;;  %v3032_v37 = vsub.f32 %v2606_v15, %v2612_v9  ;;  %v982_v15 = vmul.f32 1.442695, %v954_v16 }
 0x2cc   : > { %v1098_v40 = vmul.f32 1.442695, %v1076_v38  ;;  %v970_v38 = vmul.f32 1.442695, %v3032_v37 }
 0x2ce   : > { %2029 = vpow2.f32 %v1098_v40 }
 0x2cf   : > { %2031 = vpow2.f32 %v958_v45  ;;  %v953_v45 = vsub.f32 %v2646_v39, %v2649_v31 }
 0x2d0   : > { %2033 = vpow2.f32 %v964_v34 }
 0x2d1   : > { %v923_v21 = vpop.xlane.xlu0 %922  ;;  %2035 = vpow2.f32 %v970_v38  ;;  %v980_v34 = vmul.f32 1.442695, %v953_v45 }
 0x2d2   : > { %v2743_v48 = vmax.f32 %v2740_v62, %v923_v21  ;;  %v2781_v21 = vld [vmem:[#allocation3 + $0x68] sm:$0xff] }
 0x2d4   : > { %v2747_v49 = vpop.eup %2029  ;;  %v956_v56 = vsub.f32 %v2740_v62, %v2743_v48  ;;  %1438 = vst.msk [vmem:[#allocation3 + $0x70] sm:$0xff] %vm1198_vm4, %v2743_v48  ;;  %1062 = vperm.xlu0 %2004, %v2743_v48  }
 0x2d5   : > { %v1330_v53 = vpack.c.bf16 %v2745_v47, %v2747_v49  ;;  %v2773_v36 = vpop.eup %2031 }
 0x2d6   : > { %v2779_v40 = vpop.eup %2033 }
 0x2d7   : > { %1366 = vmatmul.bf16.gmra.mxu2 %v1330_v53 }
 0x2e0   : > { %v925_v57 = vpop.xlane.xlu2 %924 }
 0x2e1   : > { %v2762_v28 = vmax.f32 %v2756_v27, %v925_v57  ;;  %v976_v57 = vmul.f32 1.442695, %v951_v22 }
 0x2e3   : > { %v957_v26 = vsub.f32 %v2756_v27, %v2762_v28  ;;  %1439 = vst.msk [vmem:[#allocation3 + $0x78] sm:$0xff] %vm1198_vm4, %v2762_v28  ;;  %1067 = vperm.xlu0 %2004, %v2762_v28  }
 0x2e4   : > { %1150 = vadd.xlane.f32.xlu1 %v2680_v32  ;;  %v3033_v32 = vsub.f32 %v2563_v25, %v2566_v23  ;;  %v2797_v25 = vpop.eup %2035  ;;  %v3034_v23 = vsub.f32 %v2596_v35, %v2599_v19  ;;  %v3035_v19 = vsub.f32 %v2633_v12, %v2638_v41  ;;  %v1216_v12 = vld [vmem:[#allocation5 + $0x8] sm:$0xff] }
 0x2e6   : > { %v962_v18 = vmul.f32 1.442695, %v3033_v32  ;;  %v968_v51 = vmul.f32 1.442695, %v3034_v23  ;;  %v974_v39 = vmul.f32 1.442695, %v3035_v19 }
 0x2e8   : > { %2037 = vpow2.f32 %v962_v18 }
 0x2e9   : > { %2039 = vpow2.f32 %v982_v15  ;;  %v1033_v15 = vpop.permute.xlu0 %1032 }
 0x2ea   : > { %2041 = vpow2.f32 %v968_v51  ;;  %v1078_v45 = vsub.f32 %v2528_v59, %v1033_v15 }
 0x2eb   : > { %1233 = vperm.xlu0 %2004, %v2773_v36   ;;  %2043 = vpow2.f32 %v976_v57 }
 0x2ec   : > { %2045 = vpow2.f32 %v980_v34  ;;  %v1102_v57 = vmul.f32 1.442695, %v1078_v45 }
 0x2ed   : > { %2047 = vpow2.f32 %v974_v39 }
 0x2ee   : > { %v2803_v33 = vpop.eup %2037 }
 0x2ef   : > { %v2808_v20 = vpop.eup %2039 }
 0x2f0   : > { %v2811_v37 = vpop.eup %2041 }
 0x2f1   : > { %v2814_v35 = vpop.eup %2043 }
 0x2f2   : > { %v2821_v38 = vpop.eup %2045 }
 0x2f3   : > { %1248 = vperm.xlu0 %2004, %v2779_v40   ;;  %v2824_v18 = vpop.eup %2047 }
 0x2f4   : > { %v921_v53 = vpop.xlane.xlu1 %920 }
 0x2f5   : > { %v2790_v50 = vmax.f32 %v2781_v21, %v921_v53 }
 0x2f7   : > { %v955_v9 = vsub.f32 %v2781_v21, %v2790_v50  ;;  %1437 = vst.msk [vmem:[#allocation3 + $0x68] sm:$0xff] %vm1198_vm4, %v2790_v50  ;;  %1057 = vperm.xlu2 %2005, %v2790_v50   ;;  %v1129_v50 = vld [vmem:[#allocation4 + $0x58] sm:$0xff] }
 0x2f8   : > { %v1145_v27 = vmul.f32 %v2821_v38, %v1129_v50 }
 0x2fb   : > { %1263 = vperm.xlu0 %2004, %v2797_v25  }
 0x2ff   : > { %1243 = vperm.xlu2 %2005, %v2803_v33  }
 0x303   : > { %1293 = vperm.xlu0 %2004, %v2808_v20  }
 0x307   : > { %1258 = vperm.xlu2 %2005, %v2811_v37  }
 0x30b   : > { %1278 = vperm.xlu0 %2004, %v2814_v35  }
 0x30c   : > { %v1048_v31 = vpop.permute.xlu1 %1047 }
 0x30d   : > { %v1081_v22 = vsub.f32 %v2518_v55, %v1048_v31 }
 0x30f   : > { %v1108_v32 = vmul.f32 1.442695, %v1081_v22  ;;  %1288 = vperm.xlu2 %2005, %v2821_v38  }
 0x311   : > { %2049 = vpow2.f32 %v1108_v32 }
 0x312   : > { %2051 = vpow2.f32 %v1102_v57 }
 0x314   : > { %v1239_v41 = vpop.permute.xlu1 %1238 }
 0x315   : > { %v1312_v23 = vmul.f32 %v1239_v41, %v1216_v12 }
 0x317   : > { %v2050_v16 = vpop.eup %2049  ;;  %1273 = vperm.xlu2 %2005, %v2824_v18   ;;  %v2827_v53 = vpop.f32.mrf.mxu2 }
 0x318   : > { %1172 = vadd.xlane.f32.xlu1 %v2050_v16  ;;  %v2836_v41 = vpop.eup %2051 }
 0x31f   : > { %v1354_v55 = vpop.f32.mrf.mxu2 }
 0x320   : > { %v1393_v51 = vadd.f32 %v1354_v55, %v1312_v23  ;;  %1156 = vadd.xlane.f32.xlu1 %v2692_v54  ;;  %v1219_v23 = vld [vmem:[#allocation5 + $0x20] sm:$0xff]  ;;  %v1254_v55 = vpop.permute.xlu1 %1253 }
 0x322   : > { %1409 = vst.msk [vmem:[#allocation5 + $0x8] sm:$0xff] %vm675_vm3, %v1393_v51 }
 0x326   : > { %v1038_v34 = vpop.permute.xlu0 %1037 }
 0x327   : > { %v1079_v19 = vsub.f32 %v2620_v30, %v1038_v34  ;;  %v1357_v39 = vpop.f32.mrf.mxu2  ;;  %v1315_v30 = vmul.f32 %v1254_v55, %v1219_v23 }
 0x329   : > { %v1104_v31 = vmul.f32 1.442695, %v1079_v19 }
 0x32b   : > { %2053 = vpow2.f32 %v1104_v31 }
 0x32e   : > { %v1043_v22 = vpop.permute.xlu0 %1042 }
 0x32f   : > { %v1080_v32 = vsub.f32 %v2511_v52, %v1043_v22  ;;  %v2834_v12 = vpop.f32.mrf.mxu2  ;;  %v1269_v22 = vpop.permute.xlu1 %1268 }
 0x331   : > { %v2838_v54 = vpop.eup %2053  ;;  %v1106_v59 = vmul.f32 1.442695, %v1080_v32 }
 0x332   : > { %v1331_v15 = vpack.c.bf16 %v2838_v54, %v2836_v41 }
 0x333   : > { %2055 = vpow2.f32 %v1106_v59 }
 0x334   : > { %1371 = vmatmul.bf16.gmra.mxu2 %v1331_v15 }
 0x336   : > { %v1053_v51 = vpop.permute.xlu0 %1052 }
 0x337   : > { %v1362_v45 = vpop.f32.mrf.mxu2  ;;  %v1082_v52 = vsub.f32 %v2526_v58, %v1053_v51  ;;  %v2847_v58 = vpop.permute.xlu1 %1283 }
 0x338   : > { %v1396_v57 = vadd.f32 %v1362_v45, %v1315_v30  ;;  %v1118_v45 = vld [vmem:[#allocation4] sm:$0xff] }
 0x339   : > { %v2056_v34 = vpop.eup %2055  ;;  %v1110_v19 = vmul.f32 1.442695, %v1082_v52  ;;  %v1217_v52 = vld [vmem:[#allocation5 + $0x10] sm:$0xff] }
 0x33a   : > { %1412 = vst.msk [vmem:[#allocation5 + $0x20] sm:$0xff] %vm675_vm3, %v1396_v57  ;;  %1170 = vadd.xlane.f32.xlu0 %v2056_v34  ;;  %v1332_v31 = vpack.c.bf16 %v2050_v16, %v2056_v34  ;;  %v1134_v34 = vmul.f32 %v2773_v36, %v1118_v45  ;;  %v1220_v45 = vld [vmem:[#allocation5 + $0x28] sm:$0xff] }
 0x33b   : > { %2057 = vpow2.f32 %v1110_v19 }
 0x33f   : > { %v1364_v51 = vpop.f32.mrf.mxu2 }
 0x340   : > { %1154 = vadd.xlane.f32.xlu2 %v2699_v60 }
 0x341   : > { %v2058_v59 = vpop.eup %2057 }
 0x342   : > { %1152 = vadd.xlane.f32.xlu0 %v2682_v29 }
 0x344   : > { %1376 = vmatmul.bf16.gmra.mxu2 %v1332_v31 }
 0x346   : > { %v1063_v32 = vpop.permute.xlu0 %1062 }
 0x347   : > { %v1084_v15 = vsub.f32 %v2670_v46, %v1063_v32 }
 0x348   : > { %1174 = vadd.xlane.f32.xlu2 %v2058_v59 }
 0x349   : > { %v1114_v23 = vmul.f32 1.442695, %v1084_v15 }
 0x34b   : > { %2059 = vpow2.f32 %v1114_v23  ;;  %v1215_v23 = vld [vmem:[#allocation5] sm:$0xff] }
 0x351   : > { %v2060_v55 = vpop.eup %2059  ;;  %v1058_v30 = vpop.permute.xlu2 %1057 }
 0x352   : > { %v1083_v60 = vsub.f32 %v2662_v63, %v1058_v30  ;;  %1178 = vadd.xlane.f32.xlu1 %v2060_v55 }
 0x354   : > { %v1112_v29 = vmul.f32 1.442695, %v1083_v60 }
 0x355   : > { %v1068_v16 = vpop.permute.xlu0 %1067 }
 0x356   : > { %2061 = vpow2.f32 %v1112_v29  ;;  %v1085_v57 = vsub.f32 %v2673_v13, %v1068_v16  ;;  %v1222_v16 = vld [vmem:[#allocation5 + $0x38] sm:$0xff] }
 0x357   : > { %v1151_v46 = vpop.xlane.xlu1 %1150 }
 0x358   : > { %v1116_v19 = vmul.f32 1.442695, %v1085_v57  ;;  %v1182_v31 = vadd.f32 %v1151_v46, %v1134_v34  ;;  %v1318_v46 = vmul.f32 %v1269_v22, %v1222_v16 }
 0x359   : > { %v1244_v32 = vpop.permute.xlu2 %1243 }
 0x35a   : > { %2063 = vpow2.f32 %v1116_v19  ;;  %1199 = vst.msk [vmem:[#allocation4] sm:$0xff] %vm1198_vm4, %v1182_v31  ;;  %v1313_v15 = vmul.f32 %v1244_v32, %v1217_v52  ;;  %1160 = vadd.xlane.f32.xlu1 %v2720_v17  ;;  %v1367_v63 = vpop.f32.mrf.mxu2  ;;  %v1218_v31 = vld [vmem:[#allocation5 + $0x18] sm:$0xff] }
 0x35c   : > { %v2062_v30 = vpop.eup %2061  ;;  %v1394_v60 = vadd.f32 %v1357_v39, %v1313_v15 }
 0x35d   : > { %v1234_v29 = vpop.permute.xlu0 %1233  ;;  %1176 = vadd.xlane.f32.xlu0 %v2062_v30  ;;  %v1333_v13 = vpack.c.bf16 %v2062_v30, %v2058_v59 }
 0x35e   : > { %1410 = vst.msk [vmem:[#allocation5 + $0x10] sm:$0xff] %vm675_vm3, %v1394_v60  ;;  %v1311_v36 = vmul.f32 %v1234_v29, %v1215_v23  ;;  %v1128_v29 = vld [vmem:[#allocation4 + $0x50] sm:$0xff] }
 0x35f   : > { %1381 = vmatmul.bf16.gmra.mxu2 %v1333_v13  ;;  %v1144_v16 = vmul.f32 %v2733_v61, %v1128_v29  ;;  %v1130_v61 = vld [vmem:[#allocation4 + $0x60] sm:$0xff] }
 0x360   : > { %v2064_v57 = vpop.eup %2063  ;;  %v1392_v34 = vadd.f32 %v2827_v53, %v1311_v36 }
 0x361   : > { %1180 = vadd.xlane.f32.xlu2 %v2064_v57  ;;  %v1259_v52 = vpop.permute.xlu2 %1258  ;;  %v1334_v17 = vpack.c.bf16 %v2064_v57, %v2060_v55  ;;  %v1119_v57 = vld [vmem:[#allocation4 + $0x8] sm:$0xff] }
 0x362   : > { %1408 = vst.msk [vmem:[#allocation5] sm:$0xff] %vm675_vm3, %v1392_v34  ;;  %v1316_v19 = vmul.f32 %v1259_v52, %v1220_v45  ;;  %1166 = vadd.xlane.f32.xlu1 %v2836_v41  ;;  %v1369_v39 = vpop.f32.mrf.mxu2  ;;  %v1221_v41 = vld [vmem:[#allocation5 + $0x30] sm:$0xff]  ;;  %v1223_v34 = vld [vmem:[#allocation5 + $0x40] sm:$0xff] }
 0x363   : > { %v1399_v59 = vadd.f32 %v1369_v39, %v1318_v46  ;;  %1386 = vmatmul.bf16.vlgmr.msrb.gmra.mxu3 %v1334_v17  ;;  %v1120_v45 = vld [vmem:[#allocation4 + $0x10] sm:$0xff]  ;;  %v1135_v17 = vmul.f32 %v2697_v44, %v1119_v57  ;;  %v1122_v57 = vld [vmem:[#allocation4 + $0x20] sm:$0xff] }
 0x364   : > { %v1397_v32 = vadd.f32 %v1364_v51, %v1316_v19  ;;  %v984_v51 = vmul.f32 1.442695, %v955_v9 }
 0x365   : > { %1415 = vst.msk [vmem:[#allocation5 + $0x38] sm:$0xff] %vm675_vm3, %v1399_v59  ;;  %v1249_v15 = vpop.permute.xlu0 %1248  ;;  %1158 = vadd.xlane.f32.xlu0 %v2718_v24  ;;  %v988_v24 = vmul.f32 1.442695, %v957_v26 }
 0x366   : > { %1413 = vst.msk [vmem:[#allocation5 + $0x28] sm:$0xff] %vm675_vm3, %v1397_v32  ;;  %v1314_v53 = vmul.f32 %v1249_v15, %v1218_v31  ;;  %2065 = vpow2.f32 %v984_v51  ;;  %v1146_v15 = vmul.f32 %v2808_v20, %v1130_v61  ;;  %v1225_v51 = vld [vmem:[#allocation5 + $0x50] sm:$0xff] }
 0x367   : > { %2067 = vpow2.f32 %v988_v24 }
 0x368   : > { %v1395_v22 = vadd.f32 %v2834_v12, %v1314_v53  ;;  %v1121_v12 = vld [vmem:[#allocation4 + $0x18] sm:$0xff] }
 0x369   : > { %1162 = vadd.xlane.f32.xlu2 %v2747_v49 }
 0x36a   : > { %1411 = vst.msk [vmem:[#allocation5 + $0x18] sm:$0xff] %vm675_vm3, %v1395_v22 }
 0x36c   : > { %v2873_v49 = vpop.eup %2065 }
 0x36d   : > { %v1264_v55 = vpop.permute.xlu0 %1263  ;;  %1164 = vadd.xlane.f32.xlu0 %v2745_v47  ;;  %v986_v47 = vmul.f32 1.442695, %v956_v56  ;;  %v2879_v21 = vpop.eup %2067 }
 0x36e   : > { %v1317_v23 = vmul.f32 %v1264_v55, %v1221_v41  ;;  %v1289_v56 = vpop.permute.xlu2 %1288 }
 0x36f   : > { %2069 = vpow2.f32 %v986_v47  ;;  %v1321_v47 = vmul.f32 %v2847_v58, %v1225_v51 }
 0x370   : > { %v1398_v30 = vadd.f32 %v1367_v63, %v1317_v23  ;;  %v1132_v23 = vld [vmem:[#allocation4 + $0x70] sm:$0xff] }
 0x371   : > { %1168 = vadd.xlane.f32.xlu2 %v2838_v54  ;;  %v1137_v54 = vmul.f32 %v2779_v40, %v1121_v12  ;;  %v1136_v40 = vmul.f32 %v2803_v33, %v1120_v45  ;;  %v1224_v33 = vld [vmem:[#allocation5 + $0x48] sm:$0xff] }
 0x372   : > { %1414 = vst.msk [vmem:[#allocation5 + $0x30] sm:$0xff] %vm675_vm3, %v1398_v30 }
 0x375   : > { %v2070_v9 = vpop.eup %2069  ;;  %v2886_v48 = vpop.permute.xlu0 %1293 }
 0x376   : > { %v1274_v13 = vpop.permute.xlu2 %1273  ;;  %v1148_v30 = vmul.f32 %v2070_v9, %v1132_v23 }
 0x377   : > { %v1319_v39 = vmul.f32 %v1274_v13, %v1223_v34 }
 0x37b   : > { %1298 = vperm.xlu1 %2003, %v2873_v49  }
 0x37d   : > { %v1279_v60 = vpop.permute.xlu0 %1278 }
 0x37e   : > { %v1320_v41 = vmul.f32 %v1279_v60, %v1224_v33 }
 0x381   : > { %1308 = vperm.xlu0 %2004, %v2879_v21  }
 0x389   : > { %1303 = vperm.xlu2 %2005, %v2070_v9  }
 0x38b   : > { %v1173_v28 = vpop.xlane.xlu1 %1172 }
 0x38c   : > { %v1193_v26 = vadd.f32 %v1173_v28, %v1145_v27  ;;  %v1123_v28 = vld [vmem:[#allocation4 + $0x28] sm:$0xff] }
 0x38d   : > { %v1139_v12 = vmul.f32 %v2811_v37, %v1123_v28 }
 0x38e   : > { %1210 = vst.msk [vmem:[#allocation4 + $0x58] sm:$0xff] %vm1198_vm4, %v1193_v26  ;;  %v1226_v26 = vld [vmem:[#allocation5 + $0x58] sm:$0xff] }
 0x393   : > { %v1157_v63 = vpop.xlane.xlu1 %1156 }
 0x394   : > { %v1185_v62 = vadd.f32 %v1157_v63, %v1137_v54  ;;  %v1131_v54 = vld [vmem:[#allocation4 + $0x68] sm:$0xff] }
 0x395   : > { %v1147_v9 = vmul.f32 %v2873_v49, %v1131_v54 }
 0x396   : > { %1202 = vst.msk [vmem:[#allocation4 + $0x18] sm:$0xff] %vm1198_vm4, %v1185_v62  ;;  %v1322_v62 = vmul.f32 %v1289_v56, %v1226_v26 }
 0x3ad   : > { %v1171_v38 = vpop.xlane.xlu0 %1170 }
 0x3ae   : > { %v1192_v36 = vadd.f32 %v1171_v38, %v1144_v16  ;;  %v1133_v16 = vld [vmem:[#allocation4 + $0x78] sm:$0xff] }
 0x3af   : > { %v1149_v37 = vmul.f32 %v2879_v21, %v1133_v16 }
 0x3b0   : > { %1209 = vst.msk [vmem:[#allocation4 + $0x50] sm:$0xff] %vm1198_vm4, %v1192_v36  ;;  %v1126_v36 = vld [vmem:[#allocation4 + $0x40] sm:$0xff] }
 0x3b1   : > { %v1142_v56 = vmul.f32 %v2824_v18, %v1126_v36 }
 0x3b3   : > { %v1155_v46 = vpop.xlane.xlu2 %1154 }
 0x3b4   : > { %v1184_v52 = vadd.f32 %v1155_v46, %v1136_v40  ;;  %v1138_v46 = vmul.f32 %v2709_v42, %v1122_v57 }
 0x3b5   : > { %v1153_v19 = vpop.xlane.xlu0 %1152 }
 0x3b6   : > { %1201 = vst.msk [vmem:[#allocation4 + $0x10] sm:$0xff] %vm1198_vm4, %v1184_v52  ;;  %v1183_v59 = vadd.f32 %v1153_v19, %v1135_v17  ;;  %v1124_v17 = vld [vmem:[#allocation4 + $0x30] sm:$0xff] }
 0x3b7   : > { %v1372_v31 = vpop.f32.mrf.mxu2  ;;  %v1140_v21 = vmul.f32 %v2797_v25, %v1124_v17 }
 0x3b8   : > { %1200 = vst.msk [vmem:[#allocation4 + $0x8] sm:$0xff] %vm1198_vm4, %v1183_v59  ;;  %v1400_v32 = vadd.f32 %v1372_v31, %v1319_v39  ;;  %v1125_v59 = vld [vmem:[#allocation4 + $0x38] sm:$0xff]  ;;  %v1227_v31 = vld [vmem:[#allocation5 + $0x60] sm:$0xff] }
 0x3b9   : > { %v1141_v61 = vmul.f32 %v2714_v43, %v1125_v59  ;;  %v1323_v42 = vmul.f32 %v2886_v48, %v1227_v31  ;;  %v1228_v43 = vld [vmem:[#allocation5 + $0x68] sm:$0xff] }
 0x3ba   : > { %1416 = vst.msk [vmem:[#allocation5 + $0x40] sm:$0xff] %vm675_vm3, %v1400_v32 }
 0x3bb   : > { %v1175_v53 = vpop.xlane.xlu2 %1174 }
 0x3bc   : > { %v1194_v22 = vadd.f32 %v1175_v53, %v1146_v15  ;;  %v1127_v15 = vld [vmem:[#allocation4 + $0x48] sm:$0xff] }
 0x3be   : > { %1211 = vst.msk [vmem:[#allocation4 + $0x60] sm:$0xff] %vm1198_vm4, %v1194_v22 }
 0x3bf   : > { %v1374_v44 = vpop.f32.mrf.mxu2 }
 0x3c0   : > { %v1401_v55 = vadd.f32 %v1374_v44, %v1320_v41  ;;  %v1143_v41 = vmul.f32 %v2814_v35, %v1127_v15 }
 0x3c2   : > { %1417 = vst.msk [vmem:[#allocation5 + $0x48] sm:$0xff] %vm675_vm3, %v1401_v55  ;;  %v1229_v55 = vld [vmem:[#allocation5 + $0x70] sm:$0xff] }
 0x3c5   : > { %v1179_v24 = vpop.xlane.xlu1 %1178 }
 0x3c6   : > { %v1196_v50 = vadd.f32 %v1179_v24, %v1148_v30 }
 0x3c7   : > { %v1377_v27 = vpop.f32.mrf.mxu2 }
 0x3c8   : > { %1213 = vst.msk [vmem:[#allocation4 + $0x70] sm:$0xff] %vm1198_vm4, %v1196_v50  ;;  %v1402_v20 = vadd.f32 %v1377_v27, %v1321_v47 }
 0x3ca   : > { %1418 = vst.msk [vmem:[#allocation5 + $0x50] sm:$0xff] %vm675_vm3, %v1402_v20  ;;  %v1230_v20 = vld [vmem:[#allocation5 + $0x78] sm:$0xff] }
 0x3cd   : > { %v1161_v63 = vpop.xlane.xlu1 %1160 }
 0x3ce   : > { %v1187_v60 = vadd.f32 %v1161_v63, %v1139_v12 }
 0x3cf   : > { %v1379_v29 = vpop.f32.mrf.mxu2 }
 0x3d0   : > { %1204 = vst.msk [vmem:[#allocation4 + $0x28] sm:$0xff] %vm1198_vm4, %v1187_v60  ;;  %v1403_v58 = vadd.f32 %v1379_v29, %v1322_v62  ;;  %v1177_v13 = vpop.xlane.xlu0 %1176 }
 0x3d1   : > { %v1195_v38 = vadd.f32 %v1177_v13, %v1147_v9 }
 0x3d2   : > { %1419 = vst.msk [vmem:[#allocation5 + $0x58] sm:$0xff] %vm675_vm3, %v1403_v58 }
 0x3d3   : > { %1212 = vst.msk [vmem:[#allocation4 + $0x68] sm:$0xff] %vm1198_vm4, %v1195_v38 }
 0x3d4   : > { %v1181_v45 = vpop.xlane.xlu2 %1180 }
 0x3d5   : > { %v1197_v40 = vadd.f32 %v1181_v45, %v1149_v37  ;;  %v1167_v34 = vpop.xlane.xlu1 %1166 }
 0x3d6   : > { %v1190_v49 = vadd.f32 %v1167_v34, %v1142_v56 }
 0x3d7   : > { %1214 = vst.msk [vmem:[#allocation4 + $0x78] sm:$0xff] %vm1198_vm4, %v1197_v40 }
 0x3d8   : > { %1207 = vst.msk [vmem:[#allocation4 + $0x40] sm:$0xff] %vm1198_vm4, %v1190_v49  ;;  %v1159_v52 = vpop.xlane.xlu0 %1158 }
 0x3d9   : > { %v1186_v19 = vadd.f32 %v1159_v52, %v1138_v46 }
 0x3db   : > { %1203 = vst.msk [vmem:[#allocation4 + $0x20] sm:$0xff] %vm1198_vm4, %v1186_v19 }
 0x3dc   : > { %v1163_v39 = vpop.xlane.xlu2 %1162 }
 0x3dd   : > { %v1188_v18 = vadd.f32 %v1163_v39, %v1140_v21 }
 0x3df   : > { %1205 = vst.msk [vmem:[#allocation4 + $0x30] sm:$0xff] %vm1198_vm4, %v1188_v18 }
 0x3e0   : > { %v1165_v32 = vpop.xlane.xlu0 %1164 }
 0x3e1   : > { %v1189_v33 = vadd.f32 %v1165_v32, %v1141_v61 }
 0x3e2   : > { %v1382_v53 = vpop.f32.mrf.mxu2 }
 0x3e3   : > { %1206 = vst.msk [vmem:[#allocation4 + $0x38] sm:$0xff] %vm1198_vm4, %v1189_v33  ;;  %v1404_v22 = vadd.f32 %v1382_v53, %v1323_v42 }
 0x3e4   : > { %v1169_v25 = vpop.xlane.xlu2 %1168 }
 0x3e5   : > { %1420 = vst.msk [vmem:[#allocation5 + $0x60] sm:$0xff] %vm675_vm3, %v1404_v22  ;;  %v1191_v44 = vadd.f32 %v1169_v25, %v1143_v41 }
 0x3e6   : > { %v1387_v23 = vpop.f32.mrf.mxu3 }
 0x3e7   : > { %1208 = vst.msk [vmem:[#allocation4 + $0x48] sm:$0xff] %vm1198_vm4, %v1191_v44 }
 0x3ea   : > { %v1384_v47 = vpop.f32.mrf.mxu2 }
 0x3ec   : > { %v1304_v51 = vpop.permute.xlu2 %1303 }
 0x3ed   : > { %v1325_v30 = vmul.f32 %v1304_v51, %v1229_v55  ;;  %v1299_v24 = vpop.permute.xlu1 %1298 }
 0x3ee   : > { %v1324_v48 = vmul.f32 %v1299_v24, %v1228_v43  ;;  %v1389_v26 = vpop.f32.mrf.mxu3 }
 0x3ef   : > { %v1406_v50 = vadd.f32 %v1387_v23, %v1325_v30 }
 0x3f0   : > { %v1405_v27 = vadd.f32 %v1384_v47, %v1324_v48 }
 0x3f1   : > { %1422 = vst.msk [vmem:[#allocation5 + $0x70] sm:$0xff] %vm675_vm3, %v1406_v50 }
 0x3f2   : > { %1421 = vst.msk [vmem:[#allocation5 + $0x68] sm:$0xff] %vm675_vm3, %v1405_v27 }
 0x3f3   : > { %v1309_v35 = vpop.permute.xlu0 %1308 }
 0x3f4   : > { %v1326_v28 = vmul.f32 %v1309_v35, %v1230_v20  ;;  %1443 = sbr.rel (%p1887_p10) target bundleno = 1189 (0x4a5), region = 56 }
 0x3f6   : > { %v1407_v12 = vadd.f32 %v1389_v26, %v1326_v28 }
 0x3f8   : > { %1423 = vst.msk [vmem:[#allocation5 + $0x78] sm:$0xff] %vm675_vm3, %v1407_v12 }
 0x3f9   : > { %v1464_v54 = vld [vmem:[#allocation4 + $0x20] sm:$0xff]  ;;  %v1462_v63 = vld [vmem:[#allocation4 + $0x10] sm:$0xff]  ;;  %v2165_v60 = vmov 0   ;;  %v1465_v29 = vld [vmem:[#allocation4 + $0x28] sm:$0xff]  ;;  %v2924_v44 = vstv %s1588_s26 }
 0x3fa   : > { %v1460_v62 = vld [vmem:[#allocation4] sm:$0xff]  ;;  %2073 = vset.pattern.permute.xlu2 %v2165_v60  ;;  %2072 = vset.pattern.permute.xlu1 %v2165_v60  ;;  %2074 = vrcp.f32 %v1464_v54  ;;  %v1463_v9 = vld [vmem:[#allocation4 + $0x18] sm:$0xff]  ;;  %v1461_v58 = vld [vmem:[#allocation4 + $0x8] sm:$0xff] }
 0x3fb   : > { %2071 = vset.pattern.permute.xlu0 %v2165_v60  ;;  %2076 = vrcp.f32 %v1462_v63  ;;  %v1468_v36 = vld [vmem:[#allocation4 + $0x40] sm:$0xff]  ;;  %v1467_v45 = vld [vmem:[#allocation4 + $0x38] sm:$0xff]  ;;  %v1466_v57 = vld [vmem:[#allocation4 + $0x30] sm:$0xff] }
 0x3fc   : > { %2078 = vrcp.f32 %v1460_v62  ;;  %v1471_v34 = vld [vmem:[#allocation4 + $0x58] sm:$0xff]  ;;  %v1470_v46 = vld [vmem:[#allocation4 + $0x50] sm:$0xff]  ;;  %v1469_v17 = vld [vmem:[#allocation4 + $0x48] sm:$0xff] }
 0x3fd   : > { %2080 = vrcp.f32 %v1465_v29  ;;  %v1474_v21 = vld [vmem:[#allocation4 + $0x70] sm:$0xff]  ;;  %v1473_v59 = vld [vmem:[#allocation4 + $0x68] sm:$0xff]  ;;  %v1472_v31 = vld [vmem:[#allocation4 + $0x60] sm:$0xff] }
 0x3fe   : > { %2082 = vrcp.f32 %v1463_v9  ;;  %v1475_v42 = vld [vmem:[#allocation4 + $0x78] sm:$0xff]  ;;  %v1448_v22 = vld [vmem:[#allocation5 + $0x20] sm:$0xff]  ;;  %v1449_v43 = vld [vmem:[#allocation5 + $0x28] sm:$0xff] }
 0x3ff   : > { %2084 = vrcp.f32 %v1461_v58  ;;  %v1452_v47 = vld [vmem:[#allocation5 + $0x40] sm:$0xff]  ;;  %v1455_v28 = vld [vmem:[#allocation5 + $0x58] sm:$0xff] }
 0x400   : > { %v2075_v13 = vpop.eup %2074  ;;  %2086 = vrcp.f32 %v1468_v36  ;;  %v1444_v12 = vld [vmem:[#allocation5] sm:$0xff]  ;;  %v1447_v36 = vld [vmem:[#allocation5 + $0x18] sm:$0xff] }
 0x401   : > { %v2077_v16 = vpop.eup %2076  ;;  %1514 = vperm.xlu2 %2073, %v2075_v13   ;;  %2088 = vrcp.f32 %v1467_v45  ;;  %v1445_v45 = vld [vmem:[#allocation5 + $0x8] sm:$0xff] }
 0x402   : > { %v2079_v38 = vpop.eup %2078  ;;  %1504 = vperm.xlu1 %2072, %v2077_v16   ;;  %2090 = vrcp.f32 %v1466_v57  ;;  %v1458_v16 = vld [vmem:[#allocation5 + $0x70] sm:$0xff] }
 0x403   : > { %1494 = vperm.xlu0 %2071, %v2079_v38   ;;  %v2081_v37 = vpop.eup %2080  ;;  %2092 = vrcp.f32 %v1471_v34 }
 0x404   : > { %v2083_v56 = vpop.eup %2082  ;;  %2094 = vrcp.f32 %v1470_v46 }
 0x405   : > { %v2085_v40 = vpop.eup %2084  ;;  %2096 = vrcp.f32 %v1469_v17 }
 0x406   : > { %v2087_v49 = vpop.eup %2086  ;;  %2098 = vrcp.f32 %v1474_v21  ;;  %v1450_v21 = vld [vmem:[#allocation5 + $0x30] sm:$0xff] }
 0x407   : > { %v2089_v52 = vpop.eup %2088  ;;  %2100 = vrcp.f32 %v1473_v59 }
 0x408   : > { %v2091_v19 = vpop.eup %2090  ;;  %2102 = vrcp.f32 %v1472_v31 }
 0x409   : > { %1519 = vperm.xlu2 %2073, %v2081_v37   ;;  %v2093_v39 = vpop.eup %2092  ;;  %2104 = vrcp.f32 %v1475_v42 }
 0x40a   : > { %1509 = vperm.xlu1 %2072, %v2083_v56   ;;  %v2095_v18 = vpop.eup %2094 }
 0x40b   : > { %1499 = vperm.xlu0 %2071, %v2085_v40   ;;  %v2097_v61 = vpop.eup %2096 }
 0x40c   : > { %v2099_v32 = vpop.eup %2098 }
 0x40d   : > { %v2101_v15 = vpop.eup %2100 }
 0x40e   : > { %v2103_v33 = vpop.eup %2102 }
 0x40f   : > { %v2105_v53 = vpop.eup %2104 }
 0x411   : > { %1534 = vperm.xlu2 %2073, %v2087_v49  }
 0x412   : > { %1529 = vperm.xlu1 %2072, %v2089_v52  }
 0x413   : > { %1524 = vperm.xlu0 %2071, %v2091_v19   ;;  %v1451_v19 = vld [vmem:[#allocation5 + $0x38] sm:$0xff] }
 0x419   : > { %1549 = vperm.xlu2 %2073, %v2093_v39  }
 0x41a   : > { %1544 = vperm.xlu1 %2072, %v2095_v18  }
 0x41b   : > { %1539 = vperm.xlu0 %2071, %v2097_v61  }
 0x421   : > { %1564 = vperm.xlu2 %2073, %v2099_v32   ;;  %v1454_v32 = vld [vmem:[#allocation5 + $0x50] sm:$0xff] }
 0x422   : > { %1559 = vperm.xlu1 %2072, %v2101_v15   ;;  %v1453_v15 = vld [vmem:[#allocation5 + $0x48] sm:$0xff] }
 0x423   : > { %1554 = vperm.xlu0 %2071, %v2103_v33  }
 0x42b   : > { %1569 = vperm.xlu0 %2071, %v2105_v53  }
 0x45b   : > { %v1515_v41 = vpop.permute.xlu2 %1514 }
 0x45c   : > { %v1576_v25 = vmul.f32 %v1515_v41, %v1448_v22 }
 0x45e   : > { %v1594_v55 = vmul.f32 %v2924_v44, %v1576_v25 }
 0x460   : > { %v1610_v23 = vadd.f32 %v1594_v55, %v2270_v4  ;;  %v1446_v4 = vld [vmem:[#allocation5 + $0x10] sm:$0xff]  ;;  %v3036_v55 = vld [vmem:[#allocation7_spill] sm:$0xff] }
 0x462   : > { %1626 = vst.msk [vmem:[%s2260_s22 + $0x20] sm:$0xff] %vm675_vm3, %v1610_v23  ;;  %v1457_v23 = vld [vmem:[#allocation5 + $0x68] sm:$0xff] }
 0x463   : > { %v1520_v51 = vpop.permute.xlu2 %1519 }
 0x464   : > { %v1577_v30 = vmul.f32 %v1520_v51, %v1449_v43  ;;  %v1456_v43 = vld [vmem:[#allocation5 + $0x60] sm:$0xff] }
 0x466   : > { %v1595_v24 = vmul.f32 %v2924_v44, %v1577_v30 }
 0x468   : > { %v1611_v48 = vadd.f32 %v1595_v24, %v2272_v5 }
 0x46a   : > { %1627 = vst.msk [vmem:[%s2260_s22 + $0x28] sm:$0xff] %vm675_vm3, %v1611_v48 }
 0x46b   : > { %v1535_v50 = vpop.permute.xlu2 %1534 }
 0x46c   : > { %v1580_v27 = vmul.f32 %v1535_v50, %v1452_v47 }
 0x46e   : > { %v1598_v20 = vmul.f32 %v2924_v44, %v1580_v27  ;;  %v3037_v27 = vld [vmem:[#allocation9_spill] sm:$0xff] }
 0x470   : > { %v1614_v35 = vadd.f32 %v1598_v20, %v2278_v8  ;;  %v3038_v20 = vld [vmem:[#allocation8_spill] sm:$0xff] }
 0x472   : > { %1630 = vst.msk [vmem:[%s2260_s22 + $0x40] sm:$0xff] %vm675_vm3, %v1614_v35 }
 0x473   : > { %v1550_v26 = vpop.permute.xlu2 %1549 }
 0x474   : > { %v1583_v54 = vmul.f32 %v1550_v26, %v1455_v28  ;;  %v1505_v63 = vpop.permute.xlu1 %1504  ;;  %v1459_v28 = vld [vmem:[#allocation5 + $0x78] sm:$0xff] }
 0x475   : > { %v1574_v5 = vmul.f32 %v1505_v63, %v1446_v4  ;;  %v1495_v62 = vpop.permute.xlu0 %1494 }
 0x476   : > { %v1601_v60 = vmul.f32 %v2924_v44, %v1583_v54  ;;  %v1572_v29 = vmul.f32 %v1495_v62, %v1444_v12  ;;  %v3039_v54 = vld [vmem:[#allocation10_spill] sm:$0xff] }
 0x477   : > { %v1592_v9 = vmul.f32 %v2924_v44, %v1574_v5 }
 0x478   : > { %v1617_v8 = vadd.f32 %v1601_v60, %v2284_v11  ;;  %v1590_v58 = vmul.f32 %v2924_v44, %v1572_v29 }
 0x479   : > { %v1608_v13 = vadd.f32 %v1592_v9, %v2266_v2 }
 0x47a   : > { %1633 = vst.msk [vmem:[%s2260_s22 + $0x58] sm:$0xff] %vm675_vm3, %v1617_v8  ;;  %v1606_v38 = vadd.f32 %v1590_v58, %v2262_v0 }
 0x47b   : > { %1624 = vst.msk [vmem:[%s2260_s22 + $0x10] sm:$0xff] %vm675_vm3, %v1608_v13  ;;  %v1565_v37 = vpop.permute.xlu2 %1564 }
 0x47c   : > { %1622 = vst.msk [vmem:[%s2260_s22] sm:$0xff] %vm675_vm3, %v1606_v38  ;;  %v1586_v11 = vmul.f32 %v1565_v37, %v1458_v16  ;;  %v1510_v56 = vpop.permute.xlu1 %1509 }
 0x47d   : > { %v1575_v57 = vmul.f32 %v1510_v56, %v1447_v36  ;;  %v1500_v40 = vpop.permute.xlu0 %1499 }
 0x47e   : > { %v1604_v2 = vmul.f32 %v2924_v44, %v1586_v11  ;;  %v1573_v34 = vmul.f32 %v1500_v40, %v1445_v45 }
 0x47f   : > { %v1593_v49 = vmul.f32 %v2924_v44, %v1575_v57 }
 0x480   : > { %v1620_v0 = vadd.f32 %v1604_v2, %v2293_v14  ;;  %v1591_v46 = vmul.f32 %v2924_v44, %v1573_v34 }
 0x481   : > { %v1609_v52 = vadd.f32 %v1593_v49, %v2268_v3 }
 0x482   : > { %1636 = vst.msk [vmem:[%s2260_s22 + $0x70] sm:$0xff] %vm675_vm3, %v1620_v0  ;;  %v1607_v17 = vadd.f32 %v1591_v46, %v2264_v1 }
 0x483   : > { %1625 = vst.msk [vmem:[%s2260_s22 + $0x18] sm:$0xff] %vm675_vm3, %v1609_v52 }
 0x484   : > { %1623 = vst.msk [vmem:[%s2260_s22 + $0x8] sm:$0xff] %vm675_vm3, %v1607_v17  ;;  %v1530_v39 = vpop.permute.xlu1 %1529 }
 0x485   : > { %v1579_v59 = vmul.f32 %v1530_v39, %v1451_v19  ;;  %v1525_v18 = vpop.permute.xlu0 %1524 }
 0x486   : > { %v1578_v14 = vmul.f32 %v1525_v18, %v1450_v21 }
 0x487   : > { %v1597_v31 = vmul.f32 %v2924_v44, %v1579_v59 }
 0x488   : > { %v1596_v3 = vmul.f32 %v2924_v44, %v1578_v14 }
 0x489   : > { %v1613_v61 = vadd.f32 %v1597_v31, %v2276_v7 }
 0x48a   : > { %v1612_v1 = vadd.f32 %v1596_v3, %v2274_v6 }
 0x48b   : > { %1629 = vst.msk [vmem:[%s2260_s22 + $0x38] sm:$0xff] %vm675_vm3, %v1613_v61 }
 0x48c   : > { %1628 = vst.msk [vmem:[%s2260_s22 + $0x30] sm:$0xff] %vm675_vm3, %v1612_v1  ;;  %v1545_v42 = vpop.permute.xlu1 %1544 }
 0x48d   : > { %v1582_v33 = vmul.f32 %v1545_v42, %v1454_v32  ;;  %v1540_v53 = vpop.permute.xlu0 %1539 }
 0x48e   : > { %v1581_v22 = vmul.f32 %v1540_v53, %v1453_v15 }
 0x48f   : > { %v1600_v41 = vmul.f32 %v2924_v44, %v1582_v33 }
 0x490   : > { %v1599_v25 = vmul.f32 %v2924_v44, %v1581_v22 }
 0x491   : > { %v1616_v7 = vadd.f32 %v1600_v41, %v2282_v10 }
 0x492   : > { %v1615_v6 = vadd.f32 %v1599_v25, %v3036_v55 }
 0x493   : > { %1632 = vst.msk [vmem:[%s2260_s22 + $0x50] sm:$0xff] %vm675_vm3, %v1616_v7 }
 0x494   : > { %1631 = vst.msk [vmem:[%s2260_s22 + $0x48] sm:$0xff] %vm675_vm3, %v1615_v6  ;;  %v1560_v51 = vpop.permute.xlu1 %1559 }
 0x495   : > { %v1585_v30 = vmul.f32 %v1560_v51, %v1457_v23  ;;  %v1555_v24 = vpop.permute.xlu0 %1554 }
 0x496   : > { %v1584_v48 = vmul.f32 %v1555_v24, %v1456_v43 }
 0x497   : > { %v1603_v47 = vmul.f32 %v2924_v44, %v1585_v30 }
 0x498   : > { %v1602_v50 = vmul.f32 %v2924_v44, %v1584_v48 }
 0x499   : > { %v1619_v10 = vadd.f32 %v1603_v47, %v3037_v27 }
 0x49a   : > { %v1618_v35 = vadd.f32 %v1602_v50, %v3038_v20 }
 0x49b   : > { %1635 = vst.msk [vmem:[%s2260_s22 + $0x68] sm:$0xff] %vm675_vm3, %v1619_v10 }
 0x49c   : > { %1634 = vst.msk [vmem:[%s2260_s22 + $0x60] sm:$0xff] %vm675_vm3, %v1618_v35 }
 0x49d   : > { %v1570_v4 = vpop.permute.xlu0 %1569 }
 0x49e   : > { %v1587_v26 = vmul.f32 %v1570_v4, %v1459_v28 }
 0x4a0   : > { %v1605_v12 = vmul.f32 %v2924_v44, %v1587_v26 }
 0x4a2   : > { %v1621_v63 = vadd.f32 %v1605_v12, %v3039_v54 }
 0x4a4   : > { %1637 = vst.msk [vmem:[%s2260_s22 + $0x78] sm:$0xff] %vm675_vm3, %v1621_v63 }
 0x4a5 PF: > { %s18_s9 = sadd.s32 1, %s2160_s9   ;;  %s3040_s26 = smov %s2148_s29 }
 0x4a6   : > { %p15_p11 = scmp.ge.s32.totalorder %s18_s9, 10   ;;  %s3041_s27 = smov %s2152_s30 }
 0x4a7   : > { %s3042_s28 = smov %s2156_s8  ;;  %s3043_s29 = smov %s3047_s6 }
 0x4a8   : > { %s3044_s30 = smov %s3051_s10  ;;  %s3045_s8 = smov %s3055_s11 }
 0x4a9   :  { %17 = sbr.rel (!%p15_p11) target bundleno = 4 (0x4), region = 89 }

</bundles_post_ra>
